<compile_context>
chip_gen: v7x
topology: tpu7x:2x2x1
jax: 0.10.0
libtpu: 0.0.40
codegen_flags: <defaults>
</compile_context>

<pallas_src>
import functools

import jax
import jax.numpy as jnp
from jax.experimental import pallas as pl
from jax.experimental.pallas import tpu as pltpu


def _round_up(a, m):
    return (a + m - 1) // m * m


def _mlp_ln_act_kernel(x_ref, cond_ref, w_ref, b_ref, we_ref, be_ref,
                       gamma_ref, beta_ref, o_ref, *,
                       condition_bias, eps, out_valid):
    out_pad = o_ref.shape[-1]

    # Main linear: h = x @ W + b   (bf16 inputs, f32 accumulation on the MXU).
    h = jnp.dot(x_ref[...], w_ref[...], preferred_element_type=jnp.float32)
    h = h + b_ref[...]

    # Conditioning branch: cond_layers = Sequential(SiLU, Linear).
    c = cond_ref[...].astype(jnp.float32)
    c = c * jax.nn.sigmoid(c)                                   # SiLU on cond (f32)
    c = jnp.dot(c.astype(we_ref.dtype), we_ref[...],
                preferred_element_type=jnp.float32)
    c = c + be_ref[...]

    # x = x * (condition_bias + cond)     (cond[1] is always None in the module)
    # Padded feature columns of both h and c are exact zeros (zero-padded weights
    # and biases), so they stay zero here and do not pollute the LN sums.
    h = h * (condition_bias + c)

    # LayerNorm over the real feature dim (PyTorch eps=1e-5, elementwise affine).
    inv_n = 1.0 / out_valid
    mean = jnp.sum(h, axis=-1, keepdims=True) * inv_n
    centered = h - mean
    if out_valid != out_pad:
        col = jax.lax.broadcasted_iota(jnp.int32, h.shape, 1)
        centered_m = jnp.where(col < out_valid, centered, 0.0)
    else:
        centered_m = centered
    var = jnp.sum(centered_m * centered_m, axis=-1, keepdims=True) * inv_n
    h = centered * jax.lax.rsqrt(var + eps)
    h = h * gamma_ref[...] + beta_ref[...]

    # Final activation (SiLU). Dropout p=0 -> Identity.
    h = h * jax.nn.sigmoid(h)

    o_ref[...] = h.astype(o_ref.dtype)


def mlp_ln_act(x, cond, w, b, we, be, gamma, beta,
               *, condition_bias=1.0, eps=1e-5, tile_n=256):
    """x: [N, in_ch], cond: [N, cond_ch], w: [in_ch, out_ch], we: [cond_ch, out_ch].
    b, be, gamma, beta: [out_ch] or [1, out_ch]."""
    N, in_ch = x.shape
    cond_ch = cond.shape[1]
    out_ch = w.shape[1]
    assert w.shape[0] == in_ch and we.shape == (cond_ch, out_ch)
    out_dtype = x.dtype

    # Lane-/sublane-friendly padded sizes.
    in_pad = _round_up(in_ch, 128)
    cond_pad = _round_up(cond_ch, 128)
    out_pad = _round_up(out_ch, 128)
    tile_n = max(8, min(tile_n, _round_up(N, 8)))
    n_pad = _round_up(N, tile_n)

    def pad2(a, rows, cols, dtype):
        a = jnp.asarray(a)
        if a.ndim == 1:
            a = a.reshape(1, -1)
        a = jnp.pad(a, ((0, rows - a.shape[0]), (0, cols - a.shape[1])))
        return a.astype(dtype)

    # bf16 activations / weights (MXU-native); biases & LN affine stay f32.
    xp = pad2(x, n_pad, in_pad, jnp.bfloat16)
    cp = pad2(cond, n_pad, cond_pad, jnp.bfloat16)
    wp = pad2(w, in_pad, out_pad, jnp.bfloat16)
    wep = pad2(we, cond_pad, out_pad, jnp.bfloat16)
    bp = pad2(b, 1, out_pad, jnp.float32)
    bep = pad2(be, 1, out_pad, jnp.float32)
    gp = pad2(gamma, 1, out_pad, jnp.float32)
    betap = pad2(beta, 1, out_pad, jnp.float32)

    kernel = functools.partial(_mlp_ln_act_kernel,
                               condition_bias=float(condition_bias),
                               eps=float(eps),
                               out_valid=int(out_ch))

    grid = (n_pad // tile_n,)

    # VMEM estimate: double-buffered input/output tiles + resident bf16 weights,
    # with headroom; clamp below v7x's 64 MiB physical VMEM.
    est = 2 * (tile_n * in_pad * 2
               + tile_n * cond_pad * 2
               + tile_n * out_pad * jnp.dtype(out_dtype).itemsize
               + (in_pad + cond_pad) * out_pad * 2
               + 4 * out_pad * 4)
    vmem_limit = int(min(max(2 * est + (4 << 20), 16 << 20), 56 << 20))

    out = pl.pallas_call(
        kernel,
        out_shape=jax.ShapeDtypeStruct((n_pad, out_pad), out_dtype),
        grid=grid,
        in_specs=[
            pl.BlockSpec((tile_n, in_pad), lambda i: (i, 0)),     # x tile (bf16)
            pl.BlockSpec((tile_n, cond_pad), lambda i: (i, 0)),   # cond tile (bf16)
            pl.BlockSpec((in_pad, out_pad), lambda i: (0, 0)),    # W (full, bf16)
            pl.BlockSpec((1, out_pad), lambda i: (0, 0)),         # b
            pl.BlockSpec((cond_pad, out_pad), lambda i: (0, 0)),  # W_emb (full, bf16)
            pl.BlockSpec((1, out_pad), lambda i: (0, 0)),         # b_emb
            pl.BlockSpec((1, out_pad), lambda i: (0, 0)),         # LN gamma
            pl.BlockSpec((1, out_pad), lambda i: (0, 0)),         # LN beta
        ],
        out_specs=pl.BlockSpec((tile_n, out_pad), lambda i: (i, 0)),
        compiler_params=pltpu.CompilerParams(
            dimension_semantics=("parallel",),
            vmem_limit_bytes=vmem_limit),
    )(xp, cp, wp, bp, wep, bep, gp, betap)

    return out[:N, :out_ch]


def _reference(x, cond, w, b, we, be, gamma, beta, condition_bias, eps=1e-5):
    # Matches the kernel's precision path: bf16 matmul inputs, f32 accumulation.
    h = jnp.dot(x.astype(jnp.bfloat16), w.astype(jnp.bfloat16),
                preferred_element_type=jnp.float32) + b.reshape(1, -1)
    c = cond.astype(jnp.bfloat16).astype(jnp.float32)
    c = c * jax.nn.sigmoid(c)
    c = jnp.dot(c.astype(jnp.bfloat16), we.astype(jnp.bfloat16),
                preferred_element_type=jnp.float32) + be.reshape(1, -1)
    h = h * (condition_bias + c)
    mean = jnp.mean(h, axis=-1, keepdims=True)
    var = jnp.mean((h - mean) ** 2, axis=-1, keepdims=True)
    h = (h - mean) * jax.lax.rsqrt(var + eps)
    h = h * gamma.reshape(1, -1) + beta.reshape(1, -1)
    return h * jax.nn.sigmoid(h)


if __name__ == "__main__":
    # Small, MLP-consistent shapes; N chosen so both row padding (384 -> 512)
    # and a multi-step grid (2 tiles of 256) are exercised.
    N, in_ch, out_ch, cond_ch = 384, 32, 32, 16
    condition_bias = 1.0

    key = jax.random.PRNGKey(0)
    kx, kc, kw, kb, kwe, kbe = jax.random.split(key, 6)

    x = jax.random.normal(kx, (N, in_ch), dtype=jnp.float32)
    cond = jax.random.normal(kc, (N, cond_ch), dtype=jnp.float32)

    # init_weights(): kaiming_normal_ (fan_in, relu gain) since activation == 'silu'.
    # PyTorch Linear.weight is [out, in]; we store transposed [in, out] for the kernel.
    w = (jax.random.normal(kw, (in_ch, out_ch), dtype=jnp.float32)
         * jnp.sqrt(2.0 / in_ch))
    we = (jax.random.normal(kwe, (cond_ch, out_ch), dtype=jnp.float32)
          * jnp.sqrt(2.0 / cond_ch))
    # Biases keep PyTorch default init: U(-1/sqrt(fan_in), 1/sqrt(fan_in)).
    b = jax.random.uniform(kb, (out_ch,), minval=-1.0 / jnp.sqrt(in_ch),
                           maxval=1.0 / jnp.sqrt(in_ch), dtype=jnp.float32)
    be = jax.random.uniform(kbe, (out_ch,), minval=-1.0 / jnp.sqrt(cond_ch),
                            maxval=1.0 / jnp.sqrt(cond_ch), dtype=jnp.float32)
    # LayerNorm affine params (PyTorch default init).
    gamma = jnp.ones((out_ch,), dtype=jnp.float32)
    beta = jnp.zeros((out_ch,), dtype=jnp.float32)

    out = mlp_ln_act(x, cond, w, b, we, be, gamma, beta,
                     condition_bias=condition_bias)
    out = jax.block_until_ready(out)

    ref = _reference(x, cond, w, b, we, be, gamma, beta, condition_bias)
    assert out.shape == (N, out_ch)
    assert jnp.allclose(out, ref, atol=2e-3, rtol=2e-3), "mismatch vs reference"

    print("KERNEL_OK")
</pallas_src>

<mosaic_0001>
module attributes {stable_mosaic.version = 11 : i64} {
  func.func @_mlp_ln_act_kernel(%arg0: i32, %arg1: memref<256x128xbf16, #tpu.memory_space<vmem>>, %arg2: memref<256x128xbf16, #tpu.memory_space<vmem>>, %arg3: memref<128x128xbf16, #tpu.memory_space<vmem>>, %arg4: memref<1x128xf32, #tpu.memory_space<vmem>>, %arg5: memref<128x128xbf16, #tpu.memory_space<vmem>>, %arg6: memref<1x128xf32, #tpu.memory_space<vmem>>, %arg7: memref<1x128xf32, #tpu.memory_space<vmem>>, %arg8: memref<1x128xf32, #tpu.memory_space<vmem>>, %arg9: memref<256x128xf32, #tpu.memory_space<vmem>>) attributes {dimension_semantics = [#tpu.dimension_semantics<parallel>], iteration_bounds = array<i64: 2>, scalar_prefetch = 0 : i64, scratch_operands = 0 : i64, tpu.core_type = #tpu.core_type<tc>, window_params = [{transform_indices = @transform_0, window_bounds = array<i64: 256, 128>}, {transform_indices = @transform_1, window_bounds = array<i64: 256, 128>}, {pipeline_mode = #tpu.pipeline_mode<synchronous>, transform_indices = @transform_2, window_bounds = array<i64: 128, 128>}, {pipeline_mode = #tpu.pipeline_mode<synchronous>, transform_indices = @transform_3, window_bounds = array<i64: 1, 128>}, {pipeline_mode = #tpu.pipeline_mode<synchronous>, transform_indices = @transform_4, window_bounds = array<i64: 128, 128>}, {pipeline_mode = #tpu.pipeline_mode<synchronous>, transform_indices = @transform_5, window_bounds = array<i64: 1, 128>}, {pipeline_mode = #tpu.pipeline_mode<synchronous>, transform_indices = @transform_6, window_bounds = array<i64: 1, 128>}, {pipeline_mode = #tpu.pipeline_mode<synchronous>, transform_indices = @transform_7, window_bounds = array<i64: 1, 128>}, {transform_indices = @transform_8, window_bounds = array<i64: 256, 128>}]} {
    %c0 = arith.constant 0 : index
    %c0_0 = arith.constant 0 : index
    %0 = vector.load %arg1[%c0, %c0_0] : memref<256x128xbf16, #tpu.memory_space<vmem>>, vector<256x128xbf16>
    %c0_1 = arith.constant 0 : index
    %c0_2 = arith.constant 0 : index
    %1 = vector.load %arg3[%c0_1, %c0_2] : memref<128x128xbf16, #tpu.memory_space<vmem>>, vector<128x128xbf16>
    %cst = arith.constant dense<0.000000e+00> : vector<256x128xf32>
    %2 = tpu.matmul %0, %1, %cst {dimension_numbers = #tpu.dot_dimension_numbers<[1], [0], [0], [1], [0, 0, 1, 1], [], []>} : vector<256x128xbf16>, vector<128x128xbf16>, vector<256x128xf32> -> vector<256x128xf32>
    %c0_3 = arith.constant 0 : index
    %c0_4 = arith.constant 0 : index
    %3 = vector.load %arg4[%c0_3, %c0_4] : memref<1x128xf32, #tpu.memory_space<vmem>>, vector<1x128xf32>
    %4 = vector.broadcast %3 : vector<1x128xf32> to vector<256x128xf32>
    %5 = arith.addf %2, %4 : vector<256x128xf32>
    %c0_5 = arith.constant 0 : index
    %c0_6 = arith.constant 0 : index
    %6 = vector.load %arg2[%c0_5, %c0_6] : memref<256x128xbf16, #tpu.memory_space<vmem>>, vector<256x128xbf16>
    %7 = arith.extf %6 : vector<256x128xbf16> to vector<256x128xf32>
    %8 = arith.negf %7 : vector<256x128xf32>
    %9 = math.exp %8 : vector<256x128xf32>
    %cst_7 = arith.constant 1.000000e+00 : f32
    %10 = vector.broadcast %cst_7 : f32 to vector<256x128xf32>
    %11 = arith.addf %10, %9 : vector<256x128xf32>
    %12 = arith.divf %10, %11 : vector<256x128xf32>
    %13 = arith.mulf %7, %12 : vector<256x128xf32>
    %14 = arith.truncf %13 : vector<256x128xf32> to vector<256x128xbf16>
    %c0_8 = arith.constant 0 : index
    %c0_9 = arith.constant 0 : index
    %15 = vector.load %arg5[%c0_8, %c0_9] : memref<128x128xbf16, #tpu.memory_space<vmem>>, vector<128x128xbf16>
    %cst_10 = arith.constant dense<0.000000e+00> : vector<256x128xf32>
    %16 = tpu.matmul %14, %15, %cst_10 {dimension_numbers = #tpu.dot_dimension_numbers<[1], [0], [0], [1], [0, 0, 1, 1], [], []>} : vector<256x128xbf16>, vector<128x128xbf16>, vector<256x128xf32> -> vector<256x128xf32>
    %c0_11 = arith.constant 0 : index
    %c0_12 = arith.constant 0 : index
    %17 = vector.load %arg6[%c0_11, %c0_12] : memref<1x128xf32, #tpu.memory_space<vmem>>, vector<1x128xf32>
    %18 = vector.broadcast %17 : vector<1x128xf32> to vector<256x128xf32>
    %19 = arith.addf %16, %18 : vector<256x128xf32>
    %cst_13 = arith.constant 1.000000e+00 : f32
    %20 = vector.broadcast %cst_13 : f32 to vector<256x128xf32>
    %21 = arith.addf %20, %19 : vector<256x128xf32>
    %22 = arith.mulf %5, %21 : vector<256x128xf32>
    %cst_14 = arith.constant dense<0.000000e+00> : vector<256xf32>
    %23 = vector.multi_reduction <add>, %22, %cst_14 [1] : vector<256x128xf32> to vector<256xf32>
    %24 = vector.shape_cast %23 : vector<256xf32> to vector<256x1xf32>
    %cst_15 = arith.constant 3.125000e-02 : f32
    %25 = vector.broadcast %cst_15 : f32 to vector<256x1xf32>
    %26 = arith.mulf %24, %25 : vector<256x1xf32>
    %27 = vector.broadcast %26 : vector<256x1xf32> to vector<256x128xf32>
    %28 = arith.subf %22, %27 : vector<256x128xf32>
    %29 = tpu.iota {dimensions = array<i32: 1>} : vector<256x128xi32>
    %c32_i32 = arith.constant 32 : i32
    %30 = vector.broadcast %c32_i32 : i32 to vector<256x128xi32>
    %31 = arith.cmpi slt, %29, %30 : vector<256x128xi32>
    %cst_16 = arith.constant 0.000000e+00 : f32
    %32 = vector.broadcast %cst_16 : f32 to vector<256x128xf32>
    %33 = arith.select %31, %28, %32 : vector<256x128xi1>, vector<256x128xf32>
    %34 = arith.mulf %33, %33 : vector<256x128xf32>
    %cst_17 = arith.constant dense<0.000000e+00> : vector<256xf32>
    %35 = vector.multi_reduction <add>, %34, %cst_17 [1] : vector<256x128xf32> to vector<256xf32>
    %36 = vector.shape_cast %35 : vector<256xf32> to vector<256x1xf32>
    %cst_18 = arith.constant 3.125000e-02 : f32
    %37 = vector.broadcast %cst_18 : f32 to vector<256x1xf32>
    %38 = arith.mulf %36, %37 : vector<256x1xf32>
    %cst_19 = arith.constant 9.99999974E-6 : f32
    %39 = vector.broadcast %cst_19 : f32 to vector<256x1xf32>
    %40 = arith.addf %38, %39 : vector<256x1xf32>
    %41 = math.rsqrt %40 : vector<256x1xf32>
    %42 = vector.broadcast %41 : vector<256x1xf32> to vector<256x128xf32>
    %43 = arith.mulf %28, %42 : vector<256x128xf32>
    %c0_20 = arith.constant 0 : index
    %c0_21 = arith.constant 0 : index
    %44 = vector.load %arg7[%c0_20, %c0_21] : memref<1x128xf32, #tpu.memory_space<vmem>>, vector<1x128xf32>
    %45 = vector.broadcast %44 : vector<1x128xf32> to vector<256x128xf32>
    %46 = arith.mulf %43, %45 : vector<256x128xf32>
    %c0_22 = arith.constant 0 : index
    %c0_23 = arith.constant 0 : index
    %47 = vector.load %arg8[%c0_22, %c0_23] : memref<1x128xf32, #tpu.memory_space<vmem>>, vector<1x128xf32>
    %48 = vector.broadcast %47 : vector<1x128xf32> to vector<256x128xf32>
    %49 = arith.addf %46, %48 : vector<256x128xf32>
    %50 = arith.negf %49 : vector<256x128xf32>
    %51 = math.exp %50 : vector<256x128xf32>
    %cst_24 = arith.constant 1.000000e+00 : f32
    %52 = vector.broadcast %cst_24 : f32 to vector<256x128xf32>
    %53 = arith.addf %52, %51 : vector<256x128xf32>
    %54 = arith.divf %52, %53 : vector<256x128xf32>
    %55 = arith.mulf %49, %54 : vector<256x128xf32>
    %c0_25 = arith.constant 0 : index
    %c0_26 = arith.constant 0 : index
    %56 = vector.load %arg9[%c0_25, %c0_26] : memref<256x128xf32, #tpu.memory_space<vmem>>, vector<256x128xf32>
    tpu.vector_store %arg9[%c0_25, %c0_26], %55 {strides = array<i32>} : memref<256x128xf32, #tpu.memory_space<vmem>>, vector<256x128xf32>,
    return
  }
  func.func @transform_0(%arg0: i32) -> (i32, i32) {
    %c0_i32 = arith.constant 0 : i32
    %c0_i32_0 = arith.constant 0 : i32
    return %arg0, %c0_i32 : i32, i32
  }
  func.func @transform_1(%arg0: i32) -> (i32, i32) {
    %c0_i32 = arith.constant 0 : i32
    %c0_i32_0 = arith.constant 0 : i32
    return %arg0, %c0_i32 : i32, i32
  }
  func.func @transform_2(%arg0: i32) -> (i32, i32) {
    %c0_i32 = arith.constant 0 : i32
    %c0_i32_0 = arith.constant 0 : i32
    %c0_i32_1 = arith.constant 0 : i32
    return %c0_i32, %c0_i32_0 : i32, i32
  }
  func.func @transform_3(%arg0: i32) -> (i32, i32) {
    %c0_i32 = arith.constant 0 : i32
    %c0_i32_0 = arith.constant 0 : i32
    %c0_i32_1 = arith.constant 0 : i32
    return %c0_i32, %c0_i32_0 : i32, i32
  }
  func.func @transform_4(%arg0: i32) -> (i32, i32) {
    %c0_i32 = arith.constant 0 : i32
    %c0_i32_0 = arith.constant 0 : i32
    %c0_i32_1 = arith.constant 0 : i32
    return %c0_i32, %c0_i32_0 : i32, i32
  }
  func.func @transform_5(%arg0: i32) -> (i32, i32) {
    %c0_i32 = arith.constant 0 : i32
    %c0_i32_0 = arith.constant 0 : i32
    %c0_i32_1 = arith.constant 0 : i32
    return %c0_i32, %c0_i32_0 : i32, i32
  }
  func.func @transform_6(%arg0: i32) -> (i32, i32) {
    %c0_i32 = arith.constant 0 : i32
    %c0_i32_0 = arith.constant 0 : i32
    %c0_i32_1 = arith.constant 0 : i32
    return %c0_i32, %c0_i32_0 : i32, i32
  }
  func.func @transform_7(%arg0: i32) -> (i32, i32) {
    %c0_i32 = arith.constant 0 : i32
    %c0_i32_0 = arith.constant 0 : i32
    %c0_i32_1 = arith.constant 0 : i32
    return %c0_i32, %c0_i32_0 : i32, i32
  }
  func.func @transform_8(%arg0: i32) -> (i32, i32) {
    %c0_i32 = arith.constant 0 : i32
    %c0_i32_0 = arith.constant 0 : i32
    return %arg0, %c0_i32 : i32, i32
  }
}

</mosaic_0001>

<bundles_post_ra>
// kernel: tpu_custom_call.1
= control target key start
LH: loop header
LB: loop body
LE: loop exit
PB: predicated region body
PF: predicated region fallthrough
CT: control target
= control target key end

     0   :  { %s4469_s0 = inlined_call_operand.hbm [shape: bf16[512,128], index: 0, kind: input, shape index: {}]   ;;  %s4470_s1 = inlined_call_operand.hbm [shape: bf16[512,128], index: 1, kind: input, shape index: {}]   ;;  %s4471_s2 = inlined_call_operand.hbm [shape: bf16[128,128], index: 2, kind: input, shape index: {}]   ;;  %s4472_s3 = inlined_call_operand.vmem [shape: f32[1,128], index: 3, kind: input, shape index: {}]   ;;  %s4473_s4 = inlined_call_operand.hbm [shape: bf16[128,128], index: 4, kind: input, shape index: {}]   ;;  %s4474_s5 = inlined_call_operand.vmem [shape: f32[1,128], index: 5, kind: input, shape index: {}]   ;;  %s4475_s6 = inlined_call_operand.vmem [shape: f32[1,128], index: 6, kind: input, shape index: {}]   ;;  %s4476_s7 = inlined_call_operand.vmem [shape: f32[1,128], index: 7, kind: input, shape index: {}]   ;;  %s4477_s8 = inlined_call_operand.hbm [shape: f32[512,128], index: 8, kind: output, shape index: {}]  }
   0x1   :  { %4486 = sst [smem:[#allocation18_spill]] %s4469_s0 }
   0x2   :  { %4487 = sst [smem:[#allocation19_spill]] %s4471_s2 }
   0x3   :  { %4488 = sst [smem:[#allocation20_spill]] %s4473_s4 }
   0x4   :  { %13 = vsyncpa [#allocation3], 0 }
   0x5   :  { %15 = vsyncpa [#allocation3 + $0x1], 0 }
   0x6   :  { %16 = vsyncpa [#allocation6], 0 }
   0x7   :  { %18 = vsyncpa [#allocation6 + $0x1], 0 }
   0x8   :  { %19 = vsyncpa [#allocation9], 0 }
   0x9   :  { %20 = vsyncpa [#allocation4], 0 }
   0xa   :  { %22 = vsyncpa [#allocation4 + $0x1], 0  ;;  %s3233_s27 = smov 0   ;;  %s3235_s28 = smov 0  }
   0xb   :  { %s3237_s29 = smov 0   ;;  %s3239_s30 = smov 0  }
   0xc LB: > { %4489 = sst [smem:[#allocation16_spill]] %s3173_s29  ;;  %s3254_s9 = sadd.s32 4294967295, %s3177_s30   ;;  %s3177_s30 = sphi %s3239_s30, %s4516_s30   ;;  %s3173_s29 = sphi %s3237_s29, %s4515_s29   ;;  %s3169_s28 = sphi %s3235_s28, %s4514_s28   ;;  %s3165_s27 = sphi %s3233_s27, %s4513_s27  }
   0xd   : > { %s2207_s10 = sadd.s32 4294967294, %s3177_s30   ;;  %p48_p0 = scmp.ne.s32.totalorder %s3169_s28, %s3165_s27 }
   0xe   : > { %p4478_p1 = scmp.eq.s32.totalorder %s3254_s9, 0  ;;  %p230_p3 = scmp.eq.s32.totalorder %s2207_s10, 1 }
   0xf   : > { %p2208_p5 = scmp.ge.s32.totalorder %s3177_s30, 1  ;;  %p237_p7 = scmp.lt.s32.totalorder %s3177_s30, 3 }
  0x10   : > { %p3263_p4 = por %p4478_p1, %p48_p0  ;;  %p3268_p6 = por %p230_p3, %p48_p0 }
  0x11   : > { %p3273_p8 = pnand %p2208_p5, %p237_p7  ;;  %s3179_s14 = smov [#allocation7]  }
  0x12   : > { %s4490_s11 = scalar_select %p3263_p4, 1, 0 }
  0x13   : > { %s4491_s12 = scalar_select %p3268_p6, 1, 0 }
  0x14   : > { %s249_s15 = sshll.u32 %s3179_s14, 4  ;;  %p2569_p9 = pneg %p3273_p8  ;;  %s3277_s15 = int_to_ptr.vmem [resolvable:$true] %s249_s15 }
  0x15   : > { %s3180_s17 = smov [#allocation8]   ;;  %s4494_s2 = sld [smem:[#allocation19_spill]] }
  0x16   : > { %p3284_p11 = pnand %p2569_p9, %p4478_p1  ;;  %s265_s18 = sshll.u32 %s3180_s17, 4  ;;  %s3288_s18 = int_to_ptr.vmem [resolvable:$true] %s265_s18 }
  0x18   : > { %p2985_p13 = pneg %p3284_p11 }
  0x1b   : > { %s2983_s21 = scalar_lea.hbm %s4494_s2, 1024 }
  0x1c   : > { %p2984_p12 = scmp.ne.s32.totalorder %s4494_s2, %s2983_s21  ;;  %p2990_p5 = scmp.lt.u32.totalorder %s2983_s21, %s4494_s2 }
  0x1e   : > { %p2986_p0 = pnand %p2985_p13, %p2984_p12 }
  0x20   : > { %p2987_p3 = pneg %p2986_p0 }
  0x22   : > { %p2992_p7 = pnand %p2990_p5, %p2987_p3 }
  0x24   : > { %2995 = shalt.err (!%p2992_p7)
}
  0x25   : > { %s2996_s26 = scalar_lea.vmem %s3277_s15, 1024  ;;  %p3004_p2 = scmp.lt.s32.totalorder %s3277_s15, %s3277_s15 }
  0x26   : > { %p2997_p9 = scmp.ne.s32.totalorder %s3277_s15, %s2996_s26  ;;  %p3005_p12 = scmp.lt.s32.totalorder %s2996_s26, %s2996_s26 }
  0x28   : > { %p2999_p10 = pnand %p2997_p9, %p2985_p13  ;;  %p3006_p0 = por %p3005_p12, %p3004_p2 }
  0x2a   : > { %p3000_p1 = pneg %p2999_p10 }
  0x2c   : > { %p3007_p6 = pnand %p3006_p0, %p3000_p1 }
  0x2e   : > { %3010 = shalt.err (!%p3007_p6)
}
  0x2f   : > { %s4479_s10 = smov 64   ;;  %s4481_s14 = smov 4  }
  0x30   : > { %2572 = dma.hbm_to_vmem [thread:$0]  (!%p3284_p11), %s4494_s2, 1024, %s3277_s15, [#allocation6], %s4479_s10, %s4479_s10, %s4481_s14  }
  0x31   : > { %s4495_s4 = sld [smem:[#allocation20_spill]] }
  0x37   : > { %s3011_s22 = scalar_lea.hbm %s4495_s4, 1024 }
  0x38   : > { %p3012_p1 = scmp.ne.s32.totalorder %s4495_s4, %s3011_s22  ;;  %p3018_p10 = scmp.lt.u32.totalorder %s3011_s22, %s4495_s4 }
  0x3a   : > { %p3014_p2 = pnand %p3012_p1, %p2985_p13 }
  0x3c   : > { %p3015_p6 = pneg %p3014_p2 }
  0x3e   : > { %p3020_p3 = pnand %p3018_p10, %p3015_p6 }
  0x40   : > { %3023 = shalt.err (!%p3020_p3)
}
  0x41   : > { %s3024_s15 = scalar_lea.vmem %s3288_s18, 1024  ;;  %p3032_p12 = scmp.lt.s32.totalorder %s3288_s18, %s3288_s18 }
  0x42   : > { %p3025_p5 = scmp.ne.s32.totalorder %s3288_s18, %s3024_s15  ;;  %p3033_p0 = scmp.lt.s32.totalorder %s3024_s15, %s3024_s15 }
  0x44   : > { %p3027_p7 = pnand %p3025_p5, %p2985_p13  ;;  %p3034_p1 = por %p3033_p0, %p3032_p12 }
  0x46   : > { %p3028_p9 = pneg %p3027_p7 }
  0x48   : > { %p3035_p2 = pnand %p3034_p1, %p3028_p9 }
  0x4a   : > { %3038 = shalt.err (!%p3035_p2)
}
  0x4b   : > { %2575 = dma.hbm_to_vmem [thread:$0]  (!%p3284_p11), %s4495_s4, 1024, %s3288_s18, [#allocation9], %s4479_s10, %s4479_s10, %s4481_s14  }
  0x4c   : > { %s3349_s16 = sadd.s32 1, %s3177_s30   ;;  %s35_s20 = sadd.s32 1, %s3173_s29 }
  0x4d   : > { %s32_s21 = ssub.s32 %s3177_s30, %s3349_s16  ;;  %p42_p13 = scmp.ne.s32.totalorder %s3173_s29, %s3169_s28 }
  0x4e   : > { %p33_p6 = scmp.eq.s32.totalorder %s32_s21, 0  ;;  %p43_p10 = scmp.eq.s32.totalorder %s3177_s30, 0 }
  0x4f   : > { %p4496_p3 = scmp.eq.s32.totalorder %s3254_s9, 1  ;;  %p2589_p7 = scmp.lt.s32.totalorder %s3177_s30, 2 }
  0x50   : > { %s3365_s23 = scalar_select %p33_p6, %s3173_s29, %s35_s20  }
  0x51   : > { %p3359_p5 = por %p4496_p3, %p42_p13  ;;  %p44_p9 = por %p43_p10, %p42_p13 }
  0x52   : > { %4498 = sst [smem:[#allocation17_spill]] %s3365_s23  ;;  %s288_s24 = sand.u32 1, %s3173_s29  }
  0x53   : > { %s4497_s22 = scalar_select %p3359_p5, 1, 0 }
  0x54   : > { %s2212_s25 = sshll.u32 %s288_s24, 7  ;;  %s2329_s18 = sshll.u32 %s3177_s30, 11 }
  0x55   : > { %s4499_s0 = sld [smem:[#allocation18_spill]]  ;;  %s292_s19 = scalar_lea.vmem [#allocation2], %s2212_s25 }
  0x56   : > { %s299_s21 = sshll.u32 %s292_s19, 4  ;;  %p3376_p11 = pnand %p2589_p7, %p44_p9  ;;  %s3374_s21 = int_to_ptr.vmem [resolvable:$true] %s299_s21 }
  0x57   : > { %s3383_s26 = scalar_lea.hbm %s4470_s1, %s2329_s18  ;;  %s313_s15 = scalar_lea.vmem [#allocation5], %s2212_s25 }
  0x58   : > { %s3385_s2 = sshll.u32 %s313_s15, 4  ;;  %s3387_s4 = scalar_lea.sflag [#allocation3], %s288_s24  ;;  %s3419_s2 = int_to_ptr.vmem [resolvable:$true] %s3385_s2 }
  0x59   : > { %p3041_p0 = pneg %p3376_p11 }
  0x5b   : > { %s3372_s17 = scalar_lea.hbm %s4499_s0, %s2329_s18  ;;  %s3044_s10 = scalar_lea.hbm %s4499_s0, 4096 }
  0x5c   : > { %s3039_s19 = scalar_lea.hbm %s3372_s17, 2048  ;;  %p3045_p13 = scmp.lt.u32.totalorder %s3372_s17, %s4499_s0 }
  0x5d   : > { %p3040_p12 = scmp.ne.s32.totalorder %s3372_s17, %s3039_s19  ;;  %p3046_p6 = scmp.lt.u32.totalorder %s3044_s10, %s3039_s19 }
  0x5e   : > { %p3048_p3 = scmp.lt.u32.totalorder %s3039_s19, %s3372_s17 }
  0x5f   : > { %p3042_p1 = pnand %p3041_p0, %p3040_p12  ;;  %p3047_p10 = por %p3046_p6, %p3045_p13 }
  0x61   : > { %p3043_p2 = pneg %p3042_p1  ;;  %p3049_p7 = por %p3048_p3, %p3047_p10 }
  0x63   : > { %p3050_p9 = pnand %p3049_p7, %p3043_p2 }
  0x65   : > { %3053 = shalt.err (!%p3050_p9)
}
  0x66   : > { %s3054_s24 = scalar_lea.vmem %s3374_s21, 2048  ;;  %s3183_s29 = smov [#allocation2]  }
  0x67   : > { %p3055_p12 = scmp.ne.s32.totalorder %s3374_s21, %s3054_s24  ;;  %s3059_s23 = sshll.u32 %s3183_s29, 4  ;;  %s3060_s23 = int_to_ptr.vmem [resolvable:$false] %s3059_s23 }
  0x68   : > { %s3061_s25 = scalar_lea.vmem %s3060_s23, 4096  ;;  %p3062_p4 = scmp.lt.s32.totalorder %s3374_s21, %s3060_s23 }
  0x69   : > { %p3057_p1 = pnand %p3055_p12, %p3041_p0  ;;  %p3063_p13 = scmp.lt.s32.totalorder %s3061_s25, %s3054_s24 }
  0x6b   : > { %p3058_p5 = pneg %p3057_p1  ;;  %p3064_p6 = por %p3063_p13, %p3062_p4 }
  0x6d   : > { %p3065_p10 = pnand %p3064_p6, %p3058_p5 }
  0x6f   : > { %3068 = shalt.err (!%p3065_p10)
}
  0x70   : > { %s4501_s15 = smov 4   ;;  %s4502_s19 = smov 64  }
  0x71   : > { %2579 = dma.hbm_to_vmem [thread:$0]  (!%p3376_p11), %s3372_s17, 2048, %s3374_s21, %s3387_s4, %s4502_s19, %s4502_s19, %s4501_s15  }
  0x72   : > { %s309_s10 = sand.u32 1, %s3177_s30   ;;  %s3069_s18 = scalar_lea.hbm %s3383_s26, 2048 }
  0x73   : > { %s3422_s14 = scalar_lea.sflag [#allocation6], %s309_s10  ;;  %p3070_p4 = scmp.ne.s32.totalorder %s3383_s26, %s3069_s18 }
  0x74   : > { %s3074_s23 = scalar_lea.hbm %s4470_s1, 4096  ;;  %p3075_p3 = scmp.lt.u32.totalorder %s3383_s26, %s4470_s1 }
  0x75   : > { %p3072_p5 = pnand %p3070_p4, %p3041_p0  ;;  %p3076_p7 = scmp.lt.u32.totalorder %s3074_s23, %s3069_s18 }
  0x76   : > { %p3078_p12 = scmp.lt.u32.totalorder %s3069_s18, %s3383_s26 }
  0x77   : > { %p3073_p2 = pneg %p3072_p5  ;;  %p3077_p9 = por %p3076_p7, %p3075_p3 }
  0x79   : > { %p3079_p1 = por %p3078_p12, %p3077_p9 }
  0x7b   : > { %p3080_p13 = pnand %p3079_p1, %p3073_p2 }
  0x7d   : > { %3083 = shalt.err (!%p3080_p13)
}
  0x7e   : > { %s3084_s4 = scalar_lea.vmem %s3419_s2, 2048  ;;  %s3184_s17 = smov [#allocation5]  }
  0x7f   : > { %p3085_p6 = scmp.ne.s32.totalorder %s3419_s2, %s3084_s4  ;;  %s3089_s21 = sshll.u32 %s3184_s17, 4  ;;  %s3090_s21 = int_to_ptr.vmem [resolvable:$false] %s3089_s21 }
  0x80   : > { %s3091_s0 = scalar_lea.vmem %s3090_s21, 4096  ;;  %p3092_p5 = scmp.lt.s32.totalorder %s3419_s2, %s3090_s21 }
  0x81   : > { %p3087_p10 = pnand %p3085_p6, %p3041_p0  ;;  %p3093_p3 = scmp.lt.s32.totalorder %s3091_s0, %s3084_s4 }
  0x83   : > { %p3088_p4 = pneg %p3087_p10  ;;  %p3094_p7 = por %p3093_p3, %p3092_p5 }
  0x85   : > { %p3095_p9 = pnand %p3094_p7, %p3088_p4 }
  0x87   : > { %3098 = shalt.err (!%p3095_p9)
}
  0x88   : > { %2582 = dma.hbm_to_vmem [thread:$0]  (!%p3376_p11), %s3383_s26, 2048, %s3419_s2, %s3422_s14, %s4502_s19, %s4502_s19, %s4501_s15  }
  0x89   : > { %332 = sbr.rel (%p3273_p8) target bundleno = 856 (0x358), region = 52  ;;  %s3454_s10 = sand.u32 (!%p3273_p8), 1, %s3169_s28  }
  0x8a   : > { %s2219_s18 = sshll.u32 (!%p3273_p8), %s3454_s10, 7  ;;  %s335_s24 = scalar_lea.sflag (!%p3273_p8), [#allocation3], %s3454_s10 }
  0x8b   : > { %s3458_s29 = scalar_lea.vmem (!%p3273_p8), [#allocation2], %s2219_s18  ;;  %p4503_p0 = scmp.ne.s32.totalorder (!%p3273_p8), %s4490_s11, 0 }
  0x90   : > { %3144 = dma.done.wait (%p4503_p0), %s335_s24, 2048  }
  0x91   : > { %3146 = vsyncadd (%p4503_p0), %s335_s24, 4294965248  ;;  %s343_s2 = sand.u32 1, %s3254_s9   ;;  %s3465_s20 = scalar_lea.vmem [#allocation5], %s2219_s18 }
  0x92   : > { %s344_s13 = scalar_lea.sflag [#allocation6], %s343_s2 }
  0x93   : > { %3148 = dma.done.wait (%p4503_p0), %s344_s13, 2048  }
  0x94   : > { %3150 = vsyncadd (%p4503_p0), %s344_s13, 4294965248  ;;  %p4504_p8 = scmp.eq.s32.totalorder %s3254_s9, 0 }
  0x96   : > { %3152 = dma.done.wait (%p4504_p8), [#allocation6], 1024   ;;  %p4505_p11 = pmov %p4504_p8 }
  0x97   : > { %p4506_p2 = pmov %p4504_p8 }
  0x98   : > { %3154 = vsyncadd (%p4505_p11), [#allocation6], 4294966272 }
  0x99   : > { %3156 = dma.done.wait (%p4506_p2), [#allocation9], 1024   ;;  %p4507_p12 = pmov %p4506_p2 }
  0x9a   : > { %v2631_v0 = vld [vmem:[#allocation7] sm:$0xff]   ;;  %v2633_v2 = vld [vmem:[#allocation7 + $0x8] sm:$0xff]   ;;  %v2635_v4 = vld [vmem:[#allocation7 + $0x10] sm:$0xff]   ;;  %s2223_s17 = sshll.u32 %s3454_s10, 8  ;;  %s2331_s0 = sshll.u32 %s3254_s9, 12 }
  0x9b   : > { %3158 = vsyncadd (%p4507_p12), [#allocation9], 4294966272  ;;  %v2632_v1 = vld [vmem:[#allocation8] sm:$0xff]   ;;  %2459 = vmatprep.subr.bf16.mxu0 %v2631_v0  ;;  %v2634_v3 = vld [vmem:[#allocation8 + $0x8] sm:$0xff]   ;;  %s4241_s21 = scalar_lea.vmem [#allocation10], %s2223_s17  ;;  %s4420_s2 = scalar_lea.hbm %s4477_s8, %s2331_s0 }
  0x9c   : > { %2507 = vmatprep.subr.bf16.mxu1 %v2632_v1  ;;  %2460 = vmatpush3.bf16.msra.mxu0 %v2631_v0  ;;  %v2636_v5 = vld [vmem:[#allocation8 + $0x10] sm:$0xff]   ;;  %v2637_v6 = vld [vmem:[#allocation7 + $0x18] sm:$0xff]   ;;  %v2639_v8 = vld [vmem:[#allocation7 + $0x20] sm:$0xff]   ;;  %s2092_s18 = sshll.u32 %s4241_s21, 4  ;;  %s2079_s9 = scalar_lea.sflag [#allocation4], %s3454_s10  ;;  %s4422_s18 = int_to_ptr.vmem [resolvable:$true] %s2092_s18 }
  0x9d   : > { %2508 = vmatpush3.bf16.msra.mxu1 %v2632_v1  ;;  %2461 = vmatprep.subr.bf16.mxu0 %v2633_v2  ;;  %v2638_v7 = vld [vmem:[#allocation8 + $0x18] sm:$0xff]   ;;  %v2640_v9 = vld [vmem:[#allocation8 + $0x20] sm:$0xff]   ;;  %v2641_v10 = vld [vmem:[#allocation7 + $0x28] sm:$0xff]   ;;  %s3099_s13 = scalar_lea.vmem %s4422_s18, 4096  ;;  %p4508_p13 = scmp.ne.s32.totalorder %s4497_s22, 0 }
  0x9e   : > { %2509 = vmatprep.subr.bf16.mxu1 %v2634_v3  ;;  %v2642_v11 = vld [vmem:[#allocation8 + $0x28] sm:$0xff]   ;;  %v2647_v12 = vld [vmem:[%s3458_s29] sm:$0xff]   ;;  %v2643_v14 = vld [vmem:[#allocation7 + $0x30] sm:$0xff]   ;;  %p3100_p1 = scmp.ne.s32.totalorder %s4422_s18, %s3099_s13 }
  0x9f   : > { %v3481_v13 = vld [vmem:[%s3465_s20] sm:$0xff]   ;;  %2475 = vmatprep.mubr.bf16.mxu0 %v2647_v12  ;;  %v3486_v17 = vld [vmem:[%s3465_s20 + $0x8] sm:$0xff]   ;;  %v2644_v18 = vld [vmem:[#allocation8 + $0x30] sm:$0xff]  }
  0xa0   : > { %2462 = vmatpush3.bf16.msra.mxu0 %v2633_v2  ;;  %v2334_v15 = vunpack.c.l.bf16 %v3481_v13  ;;  %v2335_v16 = vunpack.c.h.bf16 %v3481_v13  ;;  %v2338_v19 = vunpack.c.l.bf16 %v3486_v17  ;;  %v2339_v20 = vunpack.c.h.bf16 %v3486_v17  ;;  %v3491_v21 = vld [vmem:[%s3465_s20 + $0x10] sm:$0xff]   ;;  %v2645_v28 = vld [vmem:[#allocation7 + $0x38] sm:$0xff]   ;;  %v3513_v34 = vld [vmem:[%s3465_s20 + $0x20] sm:$0xff]   ;;  %p3101_p6 = pnand %p3100_p1, %p4508_p13 }
  0xa1   : > { %2510 = vmatpush3.bf16.msra.mxu1 %v2634_v3  ;;  %2463 = vmatprep.subr.bf16.mxu0 %v2635_v4  ;;  %v2342_v24 = vunpack.c.l.bf16 %v3491_v21  ;;  %v2343_v25 = vunpack.c.h.bf16 %v3491_v21  ;;  %v3506_v30 = vld [vmem:[%s3465_s20 + $0x18] sm:$0xff]   ;;  %v2350_v38 = vunpack.c.l.bf16 %v3513_v34  ;;  %v3521_v39 = vld [vmem:[%s3465_s20 + $0x28] sm:$0xff]   ;;  %v2351_v40 = vunpack.c.h.bf16 %v3513_v34  ;;  %v3529_v44 = vld [vmem:[%s3465_s20 + $0x30] sm:$0xff]  }
  0xa2   : > { %2511 = vmatprep.subr.bf16.mxu1 %v2636_v5  ;;  %v2249_v22 = vmul.f32 -1.442695, %v2334_v15  ;;  %v2250_v23 = vmul.f32 -1.442695, %v2335_v16  ;;  %v2251_v26 = vmul.f32 -1.442695, %v2338_v19  ;;  %v2346_v32 = vunpack.c.l.bf16 %v3506_v30  ;;  %p3102_p10 = pneg %p3101_p6 }
  0xa3   : > { %v2252_v27 = vmul.f32 -1.442695, %v2339_v20  ;;  %v2253_v29 = vmul.f32 -1.442695, %v2342_v24  ;;  %v2254_v31 = vmul.f32 -1.442695, %v2343_v25  ;;  %v2347_v33 = vunpack.c.h.bf16 %v3506_v30 }
  0xa4   : > { %2464 = vmatpush3.bf16.msra.mxu0 %v2635_v4  ;;  %2663 = vpow2.f32 %v2249_v22  ;;  %v2646_v35 = vld [vmem:[#allocation8 + $0x38] sm:$0xff]   ;;  %v2255_v36 = vmul.f32 -1.442695, %v2346_v32  ;;  %v2354_v41 = vunpack.c.l.bf16 %v3521_v39  ;;  %v2355_v42 = vunpack.c.h.bf16 %v3521_v39  ;;  %v2648_v49 = vld [vmem:[%s3458_s29 + $0x8] sm:$0xff]   ;;  %v2649_v50 = vld [vmem:[%s3458_s29 + $0x10] sm:$0xff]  }
  0xa5   : > { %2512 = vmatpush3.bf16.msra.mxu1 %v2636_v5  ;;  %2465 = vmatprep.subr.bf16.mxu0 %v2637_v6  ;;  %2665 = vpow2.f32 %v2250_v23  ;;  %v2256_v37 = vmul.f32 -1.442695, %v2347_v33  ;;  %v2257_v43 = vmul.f32 -1.442695, %v2350_v38  ;;  %v2258_v45 = vmul.f32 -1.442695, %v2351_v40 }
  0xa6   : > { %2513 = vmatprep.subr.bf16.mxu1 %v2638_v7  ;;  %2667 = vpow2.f32 %v2251_v26  ;;  %v2259_v46 = vmul.f32 -1.442695, %v2354_v41  ;;  %v2260_v47 = vmul.f32 -1.442695, %v2355_v42  ;;  %v2358_v48 = vunpack.c.l.bf16 %v3529_v44  ;;  %v3543_v63 = vld [vmem:[%s3465_s20 + $0x38] sm:$0xff]   ;;  %v2651_v3 = vld [vmem:[%s3458_s29 + $0x20] sm:$0xff]  }
  0xa7   : > { %2669 = vpow2.f32 %v2252_v27  ;;  %v2650_v2 = vld [vmem:[%s3458_s29 + $0x18] sm:$0xff]   ;;  %v2359_v4 = vunpack.c.h.bf16 %v3529_v44 }
  0xa8   : > { %2466 = vmatpush3.bf16.msra.mxu0 %v2637_v6  ;;  %2671 = vpow2.f32 %v2253_v29  ;;  %v2261_v51 = vmul.f32 -1.442695, %v2358_v48 }
  0xa9   : > { %2514 = vmatpush3.bf16.msra.mxu1 %v2638_v7  ;;  %2467 = vmatprep.subr.bf16.mxu0 %v2639_v8  ;;  %2673 = vpow2.f32 %v2254_v31  ;;  %v3549_v7 = vld [vmem:[%s3465_s20 + $0x40] sm:$0xff]   ;;  %v2262_v26 = vmul.f32 -1.442695, %v2359_v4 }
  0xaa   : > { %2515 = vmatprep.subr.bf16.mxu1 %v2640_v9  ;;  %2675 = vpow2.f32 %v2255_v36  ;;  %v2366_v27 = vunpack.c.l.bf16 %v3549_v7  ;;  %v2367_v31 = vunpack.c.h.bf16 %v3549_v7  ;;  %v3562_v36 = vld [vmem:[%s3465_s20 + $0x50] sm:$0xff]  }
  0xab   : > { %2677 = vpow2.f32 %v2256_v37  ;;  %v2661_v7 = vld [vmem:[%s3458_s29 + $0x70] sm:$0xff]  }
  0xac   : > { %2468 = vmatpush3.bf16.msra.mxu0 %v2639_v8  ;;  %2679 = vpow2.f32 %v2257_v43 }
  0xad   : > { %2516 = vmatpush3.bf16.msra.mxu1 %v2640_v9  ;;  %2469 = vmatprep.subr.bf16.mxu0 %v2641_v10  ;;  %2681 = vpow2.f32 %v2258_v45 }
  0xae   : > { %2517 = vmatprep.subr.bf16.mxu1 %v2642_v11  ;;  %v2664_v52 = vpop.eup %2663  ;;  %2683 = vpow2.f32 %v2259_v46 }
  0xaf   : > { %v2666_v53 = vpop.eup %2665  ;;  %v917_v54 = vadd.f32 1.0, %v2664_v52  ;;  %2685 = vpow2.f32 %v2260_v47 }
  0xb0   : > { %2470 = vmatpush3.bf16.msra.mxu0 %v2641_v10  ;;  %v2668_v55 = vpop.eup %2667  ;;  %v918_v56 = vadd.f32 1.0, %v2666_v53  ;;  %2687 = vpow2.f32 %v2261_v51  ;;  %v2362_v10 = vunpack.c.l.bf16 %v3543_v63  ;;  %v3570_v51 = vld [vmem:[%s3465_s20 + $0x58] sm:$0xff]  }
  0xb1   : > { %2518 = vmatpush3.bf16.msra.mxu1 %v2642_v11  ;;  %2471 = vmatprep.subr.bf16.mxu0 %v2643_v14  ;;  %v2670_v57 = vpop.eup %2669  ;;  %2689 = vrcp.f32 %v917_v54  ;;  %v919_v58 = vadd.f32 1.0, %v2668_v55  ;;  %v3553_v11 = vld [vmem:[%s3465_s20 + $0x48] sm:$0xff]   ;;  %v2265_v55 = vmul.f32 -1.442695, %v2366_v27 }
  0xb2   : > { %2519 = vmatprep.subr.bf16.mxu1 %v2644_v18  ;;  %v2672_v59 = vpop.eup %2671  ;;  %2691 = vrcp.f32 %v918_v56  ;;  %v920_v60 = vadd.f32 1.0, %v2670_v57  ;;  %v2263_v45 = vmul.f32 -1.442695, %v2362_v10  ;;  %v2652_v54 = vld [vmem:[%s3458_s29 + $0x28] sm:$0xff]   ;;  %v2374_v56 = vunpack.c.l.bf16 %v3562_v36 }
  0xb3   : > { %v2674_v61 = vpop.eup %2673  ;;  %2693 = vrcp.f32 %v919_v58  ;;  %v921_v62 = vadd.f32 1.0, %v2672_v59  ;;  %v2653_v59 = vld [vmem:[%s3458_s29 + $0x30] sm:$0xff]  }
  0xb4   : > { %2472 = vmatpush3.bf16.msra.mxu0 %v2643_v14  ;;  %v2676_v0 = vpop.eup %2675  ;;  %2695 = vrcp.f32 %v920_v60  ;;  %v922_v1 = vadd.f32 1.0, %v2674_v61  ;;  %v2266_v60 = vmul.f32 -1.442695, %v2367_v31 }
  0xb5   : > { %2520 = vmatpush3.bf16.msra.mxu1 %v2644_v18  ;;  %2473 = vmatprep.subr.bf16.mxu0 %v2645_v28  ;;  %v2678_v5 = vpop.eup %2677  ;;  %2697 = vrcp.f32 %v921_v62  ;;  %v923_v6 = vadd.f32 1.0, %v2676_v0  ;;  %v2363_v18 = vunpack.c.h.bf16 %v3543_v63  ;;  %v2375_v0 = vunpack.c.h.bf16 %v3562_v36 }
  0xb6   : > { %2521 = vmatprep.subr.bf16.mxu1 %v2646_v35  ;;  %v2680_v8 = vpop.eup %2679  ;;  %2699 = vrcp.f32 %v922_v1  ;;  %v924_v9 = vadd.f32 1.0, %v2678_v5  ;;  %v2378_v1 = vunpack.c.l.bf16 %v3570_v51 }
  0xb7   : > { %v2682_v12 = vpop.eup %2681  ;;  %2701 = vrcp.f32 %v923_v6  ;;  %v925_v14 = vadd.f32 1.0, %v2680_v8  ;;  %v2269_v8 = vmul.f32 -1.442695, %v2374_v56 }
  0xb8   : > { %2474 = vmatpush3.bf16.msra.mxu0 %v2645_v28  ;;  %v2684_v22 = vpop.eup %2683  ;;  %2703 = vrcp.f32 %v924_v9  ;;  %v926_v23 = vadd.f32 1.0, %v2682_v12  ;;  %v2379_v9 = vunpack.c.h.bf16 %v3570_v51 }
  0xb9   : > { %2522 = vmatpush3.bf16.msra.mxu1 %v2646_v35  ;;  %v2686_v28 = vpop.eup %2685  ;;  %2705 = vrcp.f32 %v925_v14  ;;  %v927_v29 = vadd.f32 1.0, %v2684_v22  ;;  %v2370_v35 = vunpack.c.l.bf16 %v3553_v11 }
  0xba   : > { %v2688_v37 = vpop.eup %2687  ;;  %2707 = vrcp.f32 %v926_v23  ;;  %v928_v43 = vadd.f32 1.0, %v2686_v28  ;;  %v2271_v23 = vmul.f32 -1.442695, %v2378_v1 }
  0xbb   : > { %2476 = vmatmul.mubr.bf16.vlgmr.msra.gmra.mrb[0].mxu0 %v2648_v49  ;;  %v2690_v46 = vpop.eup %2689  ;;  %2709 = vrcp.f32 %v927_v29  ;;  %v929_v47 = vadd.f32 1.0, %v2688_v37  ;;  %v2264_v49 = vmul.f32 -1.442695, %v2363_v18 }
  0xbc   : > { %2479 = vmatprep.mubr.bf16.mxu0 %v2649_v50  ;;  %v2371_v50 = vunpack.c.h.bf16 %v3553_v11  ;;  %v2692_v52 = vpop.eup %2691  ;;  %v1013_v53 = vmul.f32 %v2690_v46, %v2334_v15  ;;  %2711 = vrcp.f32 %v928_v43  ;;  %v2267_v15 = vmul.f32 -1.442695, %v2370_v35 }
  0xbd   : > { %v2694_v57 = vpop.eup %2693  ;;  %v1014_v58 = vmul.f32 %v2692_v52, %v2335_v16  ;;  %2713 = vpow2.f32 %v2262_v26  ;;  %v2272_v46 = vmul.f32 -1.442695, %v2379_v9  ;;  %v2655_v52 = vld [vmem:[%s3458_s29 + $0x40] sm:$0xff]  }
  0xbe   : > { %v2696_v61 = vpop.eup %2695  ;;  %v1015_v62 = vmul.f32 %v2694_v57, %v2338_v19  ;;  %2715 = vrcp.f32 %v929_v47  ;;  %v2268_v5 = vmul.f32 -1.442695, %v2371_v50 }
  0xbf   : > { %v2698_v13 = vpop.eup %2697  ;;  %v1045_v16 = vpack.c.bf16 %v1014_v58, %v1013_v53  ;;  %2717 = vpow2.f32 %v2263_v45  ;;  %v2654_v45 = vld [vmem:[%s3458_s29 + $0x38] sm:$0xff]  }
  0xc0   : > { %v2700_v6 = vpop.eup %2699  ;;  %v1017_v19 = vmul.f32 %v2698_v13, %v2342_v24  ;;  %2719 = vpow2.f32 %v2264_v49  ;;  %v2270_v24 = vmul.f32 -1.442695, %v2375_v0 }
  0xc1   : > { %v2702_v12 = vpop.eup %2701  ;;  %2523 = vmatprep.mubr.bf16.mxu1 %v1045_v16  ;;  %v1018_v17 = vmul.f32 %v2700_v6, %v2343_v25  ;;  %2721 = vpow2.f32 %v2265_v55 }
  0xc2   : > { %v2704_v22 = vpop.eup %2703  ;;  %2723 = vpow2.f32 %v2266_v60  ;;  %v1019_v25 = vmul.f32 %v2702_v12, %v2346_v32 }
  0xc3   : > { %2480 = vmatmul.mubr.bf16.gmra.mrb[4].mxu0 %v2650_v2  ;;  %v3590_v2 = vld [vmem:[%s3465_s20 + $0x60] sm:$0xff]   ;;  %v2706_v28 = vpop.eup %2705  ;;  %v1047_v21 = vpack.c.bf16 %v1018_v17, %v1017_v19  ;;  %v1020_v29 = vmul.f32 %v2704_v22, %v2347_v33  ;;  %2725 = vpow2.f32 %v2267_v15  ;;  %v2657_v19 = vld [vmem:[%s3458_s29 + $0x50] sm:$0xff]  }
  0xc4   : > { %2483 = vmatprep.mubr.bf16.mxu0 %v2651_v3  ;;  %v1016_v3 = vmul.f32 %v2696_v61, %v2339_v20  ;;  %v2382_v20 = vunpack.c.l.bf16 %v3590_v2  ;;  %v2383_v26 = vunpack.c.h.bf16 %v3590_v2  ;;  %v2708_v37 = vpop.eup %2707  ;;  %v1021_v43 = vmul.f32 %v2706_v28, %v2350_v38  ;;  %v3636_v17 = vld [vmem:[%s3465_s20 + $0x70] sm:$0xff]  }
  0xc5   : > { %2727 = vpow2.f32 %v2268_v5  ;;  %v2710_v47 = vpop.eup %2709  ;;  %v1022_v49 = vmul.f32 %v2708_v37, %v2351_v40  ;;  %v1048_v53 = vpack.c.bf16 %v1020_v29, %v1019_v25  ;;  %v3640_v25 = vld [vmem:[%s3465_s20 + $0x78] sm:$0xff]  }
  0xc6   : > { %v1046_v14 = vpack.c.bf16 %v1016_v3, %v1015_v62  ;;  %2729 = vpow2.f32 %v2269_v8  ;;  %v2273_v30 = vmul.f32 -1.442695, %v2382_v20  ;;  %v2712_v32 = vpop.eup %2711  ;;  %v2274_v38 = vmul.f32 -1.442695, %v2383_v26  ;;  %v3630_v62 = vld [vmem:[%s3465_s20 + $0x68] sm:$0xff]   ;;  %s3185_s20 = smov [#allocation10]  }
  0xc7   : > { %2731 = vpow2.f32 %v2270_v24  ;;  %v2714_v33 = vpop.eup %2713  ;;  %v1049_v55 = vpack.c.bf16 %v1022_v49, %v1021_v43  ;;  %v1023_v60 = vmul.f32 %v2710_v47, %v2354_v41  ;;  %v1024_v15 = vmul.f32 %v2712_v32, %v2355_v42  ;;  %v2656_v3 = vld [vmem:[%s3458_s29 + $0x48] sm:$0xff]   ;;  %v2658_v32 = vld [vmem:[%s3458_s29 + $0x58] sm:$0xff]   ;;  %s3103_s11 = sshll.u32 %s3185_s20, 4  ;;  %s3104_s11 = int_to_ptr.vmem [resolvable:$false] %s3103_s11 }
  0xc8   : > { %2524 = vmatmul.mubr.bf16.vlgmr.msra.gmra.mrb[0].mxu1 %v1046_v14  ;;  %2733 = vpow2.f32 %v2271_v23  ;;  %v930_v57 = vadd.f32 1.0, %v2714_v33  ;;  %v2386_v39 = vunpack.c.l.bf16 %v3630_v62  ;;  %s3105_s26 = scalar_lea.vmem %s3104_s11, 8192  ;;  %p3106_p4 = scmp.lt.s32.totalorder %s4422_s18, %s3104_s11 }
  0xc9   : > { %2527 = vmatprep.mubr.bf16.mxu1 %v1047_v21  ;;  %2735 = vpow2.f32 %v2272_v46  ;;  %v1050_v12 = vpack.c.bf16 %v1024_v15, %v1023_v60  ;;  %v2387_v21 = vunpack.c.h.bf16 %v3630_v62  ;;  %p3107_p5 = scmp.lt.s32.totalorder %s3105_s26, %s3099_s13 }
  0xca   : > { %2737 = vpow2.f32 %v2273_v30  ;;  %v2275_v43 = vmul.f32 -1.442695, %v2386_v39 }
  0xcb   : > { %2484 = vmatmul.mubr.bf16.gmra.mrb[8].mxu0 %v2652_v54  ;;  %v2716_v54 = vpop.eup %2715  ;;  %2739 = vrcp.f32 %v930_v57  ;;  %v2659_v57 = vld [vmem:[%s3458_s29 + $0x60] sm:$0xff]   ;;  %p3108_p3 = por %p3107_p5, %p3106_p4 }
  0xcc   : > { %2487 = vmatprep.mubr.bf16.mxu0 %v2653_v59  ;;  %v2718_v34 = vpop.eup %2717  ;;  %2741 = vpow2.f32 %v2274_v38  ;;  %v1025_v47 = vmul.f32 %v2716_v54, %v2358_v48  ;;  %v2395_v48 = vunpack.c.h.bf16 %v3640_v25 }
  0xcd   : > { %v2720_v40 = vpop.eup %2719  ;;  %v931_v58 = vadd.f32 1.0, %v2718_v34  ;;  %v2276_v34 = vmul.f32 -1.442695, %v2387_v21  ;;  %p3109_p7 = pnand %p3108_p3, %p3102_p10 }
  0xce   : > { %v2722_v59 = vpop.eup %2721  ;;  %v932_v61 = vadd.f32 1.0, %v2720_v40 }
  0xcf   : > { %v2724_v13 = vpop.eup %2723  ;;  %2743 = vrcp.f32 %v931_v58  ;;  %v933_v16 = vadd.f32 1.0, %v2722_v59 }
  0xd0   : > { %2528 = vmatmul.mubr.bf16.gmra.mrb[4].mxu1 %v1048_v53  ;;  %v2726_v5 = vpop.eup %2725  ;;  %2745 = vrcp.f32 %v932_v61  ;;  %v934_v6 = vadd.f32 1.0, %v2724_v13  ;;  %v2394_v53 = vunpack.c.l.bf16 %v3640_v25  ;;  %v3711_v25 = vld [vmem:[%s4474_s5] ss:$0 sm:$0xff] }
  0xd1   : > { %2531 = vmatprep.mubr.bf16.mxu1 %v1049_v55  ;;  %v2728_v8 = vpop.eup %2727  ;;  %2747 = vrcp.f32 %v933_v16  ;;  %v935_v41 = vadd.f32 1.0, %v2726_v5 }
  0xd2   : > { %v2730_v42 = vpop.eup %2729  ;;  %2749 = vrcp.f32 %v934_v6  ;;  %v936_v14 = vadd.f32 1.0, %v2728_v8  ;;  %v2279_v13 = vmul.f32 -1.442695, %v2394_v53 }
  0xd3   : > { %2488 = vmatmul.mubr.bf16.gmra.mrb[12].mxu0 %v2654_v45  ;;  %v2732_v22 = vpop.eup %2731  ;;  %2751 = vrcp.f32 %v935_v41  ;;  %v937_v24 = vadd.f32 1.0, %v2730_v42  ;;  %v2390_v45 = vunpack.c.l.bf16 %v3636_v17  ;;  %v2660_v42 = vld [vmem:[%s3458_s29 + $0x68] sm:$0xff]  }
  0xd4   : > { %2491 = vmatprep.mubr.bf16.mxu0 %v2655_v52  ;;  %v2734_v23 = vpop.eup %2733  ;;  %2753 = vrcp.f32 %v936_v14  ;;  %v938_v28 = vadd.f32 1.0, %v2732_v22  ;;  %v2391_v52 = vunpack.c.h.bf16 %v3636_v17 }
  0xd5   : > { %v2736_v29 = vpop.eup %2735  ;;  %2755 = vrcp.f32 %v937_v24  ;;  %v939_v37 = vadd.f32 1.0, %v2734_v23  ;;  %v2277_v58 = vmul.f32 -1.442695, %v2390_v45 }
  0xd6   : > { %v2738_v46 = vpop.eup %2737  ;;  %2757 = vrcp.f32 %v938_v28  ;;  %v940_v49 = vadd.f32 1.0, %v2736_v29  ;;  %v2278_v44 = vmul.f32 -1.442695, %v2391_v52 }
  0xd7   : > { %v2740_v30 = vpop.eup %2739  ;;  %2759 = vrcp.f32 %v939_v37  ;;  %v941_v33 = vadd.f32 1.0, %v2738_v46  ;;  %v2662_v46 = vld [vmem:[%s3458_s29 + $0x78] sm:$0xff]  }
  0xd8   : > { %2532 = vmatmul.mubr.bf16.gmra.mrb[8].mxu1 %v1050_v12  ;;  %v2742_v38 = vpop.eup %2741  ;;  %v1026_v55 = vmul.f32 %v2740_v30, %v2359_v4  ;;  %2761 = vrcp.f32 %v940_v49 }
  0xd9   : > { %v2744_v54 = vpop.eup %2743  ;;  %v942_v40 = vadd.f32 1.0, %v2742_v38  ;;  %2763 = vrcp.f32 %v941_v33 }
  0xda   : > { %v2746_v59 = vpop.eup %2745  ;;  %v1051_v60 = vpack.c.bf16 %v1026_v55, %v1025_v47  ;;  %v1027_v15 = vmul.f32 %v2744_v54, %v2362_v10  ;;  %2765 = vpow2.f32 %v2275_v43  ;;  %v2280_v10 = vmul.f32 -1.442695, %v2395_v48 }
  0xdb   : > { %2492 = vmatmul.mubr.bf16.gmra.mrb[16].mxu0 %v2656_v3  ;;  %v2748_v4 = vpop.eup %2747  ;;  %v1028_v61 = vmul.f32 %v2746_v59, %v2363_v18  ;;  %2767 = vrcp.f32 %v942_v40 }
  0xdc   : > { %2495 = vmatprep.mubr.bf16.mxu0 %v2657_v19  ;;  %v2750_v16 = vpop.eup %2749  ;;  %2535 = vmatprep.mubr.bf16.mxu1 %v1051_v60  ;;  %v1029_v3 = vmul.f32 %v2748_v4, %v2366_v27  ;;  %2769 = vpow2.f32 %v2276_v34 }
  0xdd   : > { %v2752_v5 = vpop.eup %2751  ;;  %v1052_v63 = vpack.c.bf16 %v1028_v61, %v1027_v15  ;;  %v1030_v18 = vmul.f32 %v2750_v16, %v2367_v31  ;;  %2771 = vpow2.f32 %v2277_v58 }
  0xde   : > { %v2754_v6 = vpop.eup %2753  ;;  %2773 = vpow2.f32 %v2278_v44  ;;  %v1031_v27 = vmul.f32 %v2752_v5, %v2370_v35 }
  0xdf   : > { %v2756_v19 = vpop.eup %2755  ;;  %v1053_v8 = vpack.c.bf16 %v1030_v18, %v1029_v3  ;;  %v1032_v41 = vmul.f32 %v2754_v6, %v2371_v50  ;;  %2775 = vpow2.f32 %v2279_v13 }
  0xe0   : > { %2536 = vmatmul.mubr.bf16.gmra.mrb[12].mxu1 %v1052_v63  ;;  %v2758_v12 = vpop.eup %2757  ;;  %v1033_v14 = vmul.f32 %v2756_v19, %v2374_v56  ;;  %2777 = vpow2.f32 %v2280_v10  ;;  %v3706_v63 = vld [vmem:[%s4472_s3] ss:$0 sm:$0xff] }
  0xe1   : > { %v2760_v31 = vpop.eup %2759  ;;  %2539 = vmatprep.mubr.bf16.mxu1 %v1053_v8  ;;  %v1034_v22 = vmul.f32 %v2758_v12, %v2375_v0  ;;  %v1054_v35 = vpack.c.bf16 %v1032_v41, %v1031_v27 }
  0xe2   : > { %v2762_v24 = vpop.eup %2761  ;;  %v1035_v56 = vmul.f32 %v2760_v31, %v2378_v1 }
  0xe3   : > { %2496 = vmatmul.mubr.bf16.gmra.mrb[20].mxu0 %v2658_v32  ;;  %v2764_v23 = vpop.eup %2763  ;;  %v1055_v50 = vpack.c.bf16 %v1034_v22, %v1033_v14  ;;  %v1036_v36 = vmul.f32 %v2762_v24, %v2379_v9 }
  0xe4   : > { %2499 = vmatprep.mubr.bf16.mxu0 %v2659_v57  ;;  %v2766_v11 = vpop.eup %2765  ;;  %v1037_v49 = vmul.f32 %v2764_v23, %v2382_v20 }
  0xe5   : > { %v2768_v28 = vpop.eup %2767  ;;  %v943_v29 = vadd.f32 1.0, %v2766_v11  ;;  %v1056_v51 = vpack.c.bf16 %v1036_v36, %v1035_v56 }
  0xe6   : > { %v2770_v37 = vpop.eup %2769  ;;  %v1038_v30 = vmul.f32 %v2768_v28, %v2383_v26 }
  0xe7   : > { %v2772_v43 = vpop.eup %2771  ;;  %v944_v0 = vadd.f32 1.0, %v2770_v37  ;;  %2779 = vrcp.f32 %v943_v29 }
  0xe8   : > { %2540 = vmatmul.mubr.bf16.gmra.mrb[16].mxu1 %v1054_v35  ;;  %v2774_v47 = vpop.eup %2773  ;;  %v945_v32 = vadd.f32 1.0, %v2772_v43  ;;  %v1057_v57 = vpack.c.bf16 %v1038_v30, %v1037_v49 }
  0xe9   : > { %2543 = vmatprep.mubr.bf16.mxu1 %v1055_v50  ;;  %v2776_v33 = vpop.eup %2775  ;;  %2781 = vrcp.f32 %v944_v0  ;;  %v946_v38 = vadd.f32 1.0, %v2774_v47 }
  0xea   : > { %v2778_v55 = vpop.eup %2777  ;;  %2783 = vrcp.f32 %v945_v32  ;;  %v947_v1 = vadd.f32 1.0, %v2776_v33 }
  0xeb   : > { %2500 = vmatmul.mubr.bf16.gmra.mrb[24].mxu0 %v2660_v42  ;;  %2785 = vrcp.f32 %v946_v38  ;;  %v948_v9 = vadd.f32 1.0, %v2778_v55 }
  0xec   : > { %2503 = vmatprep.mubr.bf16.mxu0 %v2661_v7  ;;  %2787 = vrcp.f32 %v947_v1 }
  0xed   : > { %2789 = vrcp.f32 %v948_v9 }
  0xf0   : > { %2544 = vmatmul.mubr.bf16.gmra.mrb[20].mxu1 %v1056_v51 }
  0xf1   : > { %2547 = vmatprep.mubr.bf16.mxu1 %v1057_v57  ;;  %v2780_v20 = vpop.eup %2779 }
  0xf2   : > { %v1039_v2 = vmul.f32 %v2780_v20, %v2386_v39 }
  0xf3   : > { %2504 = vmatmul.mubr.bf16.gmra.mrb[28].mxu0 %v2662_v46  ;;  %v2782_v26 = vpop.eup %2781 }
  0xf4   : > { %v2784_v34 = vpop.eup %2783  ;;  %v1040_v54 = vmul.f32 %v2782_v26, %v2387_v21 }
  0xf5   : > { %v2786_v40 = vpop.eup %2785  ;;  %v1041_v58 = vmul.f32 %v2784_v34, %v2390_v45 }
  0xf6   : > { %v2788_v59 = vpop.eup %2787  ;;  %v1058_v60 = vpack.c.bf16 %v1040_v54, %v1039_v2  ;;  %v1042_v15 = vmul.f32 %v2786_v40, %v2391_v52 }
  0xf7   : > { %v2790_v44 = vpop.eup %2789  ;;  %v1043_v39 = vmul.f32 %v2788_v59, %v2394_v53 }
  0xf8   : > { %2548 = vmatmul.mubr.bf16.gmra.mrb[24].mxu1 %v1058_v60  ;;  %v1059_v4 = vpack.c.bf16 %v1042_v15, %v1041_v58  ;;  %v1044_v61 = vmul.f32 %v2790_v44, %v2395_v48 }
  0xfa   : > { %2551 = vmatprep.mubr.bf16.mxu1 %v1059_v4  ;;  %v1060_v62 = vpack.c.bf16 %v1044_v61, %v1043_v39 }
 0x100   : > { %2552 = vmatmul.mubr.bf16.gmra.mrb[28].mxu1 %v1060_v62 }
 0x18e   : > { %v2477_v21 = vpop.f32.mrb[0].mxu0 }
 0x18f   : > { %v630_v13 = vpop.f32.mrb[1].mxu0  ;;  %v639_v19 = vadd.f32 %v2477_v21, %v3706_v63 }
 0x190   : > { %v2478_v45 = vpop.f32.mrb[2].mxu0  ;;  %v631_v41 = vadd.f32 %v3706_v63, %v630_v13 }
 0x191   : > { %v633_v16 = vpop.f32.mrb[3].mxu0  ;;  %v642_v23 = vadd.f32 %v2478_v45, %v3706_v63 }
 0x192   : > { %v634_v28 = vadd.f32 %v3706_v63, %v633_v16 }
 0x196   : > { %v2481_v3 = vpop.f32.mrb[4].mxu0 }
 0x197   : > { %v646_v10 = vpop.f32.mrb[5].mxu0  ;;  %v655_v49 = vadd.f32 %v2481_v3, %v3706_v63 }
 0x198   : > { %v2482_v17 = vpop.f32.mrb[6].mxu0  ;;  %v647_v33 = vadd.f32 %v3706_v63, %v646_v10 }
 0x199   : > { %v649_v52 = vpop.f32.mrb[7].mxu0  ;;  %v658_v51 = vadd.f32 %v2482_v17, %v3706_v63 }
 0x19a   : > { %v650_v58 = vadd.f32 %v3706_v63, %v649_v52 }
 0x19b   : > { %v2525_v18 = vpop.f32.mrb[0].mxu1 }
 0x19c   : > { %v1175_v8 = vadd.f32 %v2525_v18, %v3711_v25  ;;  %v1166_v27 = vpop.f32.mrb[1].mxu1 }
 0x19d   : > { %v1167_v42 = vadd.f32 %v3711_v25, %v1166_v27  ;;  %v2526_v12 = vpop.f32.mrb[2].mxu1 }
 0x19e   : > { %v2485_v5 = vpop.f32.mrb[8].mxu0  ;;  %v1295_v14 = vadd.f32 1.0, %v1175_v8  ;;  %v1178_v7 = vadd.f32 %v2526_v12, %v3711_v25  ;;  %v1169_v31 = vpop.f32.mrb[3].mxu1 }
 0x19f   : > { %v662_v53 = vpop.f32.mrb[9].mxu0  ;;  %v1293_v22 = vadd.f32 1.0, %v1167_v42  ;;  %v1170_v24 = vadd.f32 %v3711_v25, %v1169_v31  ;;  %v671_v62 = vadd.f32 %v2485_v5, %v3706_v63 }
 0x1a0   : > { %v3713_v48 = vpop.f32.mrb[10].mxu0  ;;  %v1296_v35 = vadd.f32 1.0, %v1178_v7  ;;  %v3724_v11 = vmul.f32 %v1295_v14, %v639_v19  ;;  %v663_v16 = vadd.f32 %v3706_v63, %v662_v53 }
 0x1a1   : > { %v3715_v6 = vpop.f32.mrb[11].mxu0  ;;  %v1294_v29 = vadd.f32 1.0, %v1170_v24  ;;  %v3729_v37 = vmul.f32 %v1293_v22, %v631_v41  ;;  %v674_v17 = vadd.f32 %v3713_v48, %v3706_v63 }
 0x1a2   : > { %1361 = vadd.xlane.f32.xlu1 %v3724_v11  ;;  %v3734_v56 = vmul.f32 %v1296_v35, %v642_v23  ;;  %v666_v53 = vadd.f32 %v3706_v63, %v3715_v6 }
 0x1a3   : > { %v2529_v0 = vpop.f32.mrb[4].mxu1  ;;  %1357 = vadd.xlane.f32.xlu0 %v3729_v37  ;;  %v3739_v46 = vmul.f32 %v1294_v29, %v634_v28 }
 0x1a4   : > { %v1191_v30 = vadd.f32 %v2529_v0, %v3711_v25  ;;  %v1182_v32 = vpop.f32.mrb[5].mxu1 }
 0x1a5   : > { %v1183_v38 = vadd.f32 %v3711_v25, %v1182_v32  ;;  %v2530_v55 = vpop.f32.mrb[6].mxu1 }
 0x1a6   : > { %v3726_v50 = vpop.f32.mrb[12].mxu0  ;;  %v1299_v1 = vadd.f32 1.0, %v1191_v30  ;;  %v1194_v9 = vadd.f32 %v2530_v55, %v3711_v25  ;;  %v1185_v57 = vpop.f32.mrb[7].mxu1  ;;  %1363 = vadd.xlane.f32.xlu1 %v3734_v56 }
 0x1a7   : > { %v3731_v43 = vpop.f32.mrb[13].mxu0  ;;  %v1297_v20 = vadd.f32 1.0, %v1183_v38  ;;  %v1186_v2 = vadd.f32 %v3711_v25, %v1185_v57  ;;  %1359 = vadd.xlane.f32.xlu0 %v3739_v46  ;;  %v687_v6 = vadd.f32 %v3726_v50, %v3706_v63 }
 0x1a8   : > { %v3736_v36 = vpop.f32.mrb[14].mxu0  ;;  %v1300_v26 = vadd.f32 1.0, %v1194_v9  ;;  %v3752_v34 = vmul.f32 %v1299_v1, %v655_v49  ;;  %v679_v28 = vadd.f32 %v3706_v63, %v3731_v43 }
 0x1a9   : > { %v3741_v47 = vpop.f32.mrb[15].mxu0  ;;  %v1298_v40 = vadd.f32 1.0, %v1186_v2  ;;  %v3757_v59 = vmul.f32 %v1297_v20, %v647_v33  ;;  %v690_v30 = vadd.f32 %v3736_v36, %v3706_v63 }
 0x1aa   : > { %v3761_v15 = vmul.f32 %v1300_v26, %v658_v51  ;;  %v682_v36 = vadd.f32 %v3706_v63, %v3741_v47 }
 0x1ab   : > { %v2533_v4 = vpop.f32.mrb[8].mxu1  ;;  %1369 = vadd.xlane.f32.xlu0 %v3752_v34  ;;  %v3766_v39 = vmul.f32 %v1298_v40, %v650_v58 }
 0x1ac   : > { %v1207_v21 = vadd.f32 %v2533_v4, %v3711_v25  ;;  %v1198_v13 = vpop.f32.mrb[9].mxu1  ;;  %1371 = vadd.xlane.f32.xlu1 %v3761_v15 }
 0x1ad   : > { %v1199_v45 = vadd.f32 %v3711_v25, %v1198_v13  ;;  %v2534_v3 = vpop.f32.mrb[10].mxu1 }
 0x1ae   : > { %v3754_v54 = vpop.f32.mrb[16].mxu0  ;;  %v1303_v10 = vadd.f32 1.0, %v1207_v21  ;;  %v1210_v52 = vadd.f32 %v2534_v3, %v3711_v25  ;;  %v1201_v18 = vpop.f32.mrb[11].mxu1 }
 0x1af   : > { %v3759_v60 = vpop.f32.mrb[17].mxu0  ;;  %v1301_v19 = vadd.f32 1.0, %v1199_v45  ;;  %v1202_v5 = vadd.f32 %v3711_v25, %v1201_v18  ;;  %1365 = vadd.xlane.f32.xlu0 %v3757_v59  ;;  %v703_v4 = vadd.f32 %v3754_v54, %v3706_v63 }
 0x1b0   : > { %v3763_v44 = vpop.f32.mrb[18].mxu0  ;;  %v1304_v8 = vadd.f32 1.0, %v1210_v52  ;;  %1367 = vadd.xlane.f32.xlu1 %v3766_v39  ;;  %v3781_v27 = vmul.f32 %v1303_v10, %v671_v62  ;;  %v695_v21 = vadd.f32 %v3706_v63, %v3759_v60 }
 0x1b1   : > { %v3768_v61 = vpop.f32.mrb[19].mxu0  ;;  %v1302_v42 = vadd.f32 1.0, %v1202_v5  ;;  %v3787_v48 = vmul.f32 %v1301_v19, %v663_v16  ;;  %v706_v3 = vadd.f32 %v3763_v44, %v3706_v63 }
 0x1b2   : > { %v3791_v14 = vmul.f32 %v1304_v8, %v674_v17  ;;  %v698_v44 = vadd.f32 %v3706_v63, %v3768_v61 }
 0x1b3   : > { %1377 = vadd.xlane.f32.xlu0 %v3781_v27  ;;  %v3796_v31 = vmul.f32 %v1302_v42, %v666_v53  ;;  %v2537_v24 = vpop.f32.mrb[12].mxu1 }
 0x1b4   : > { %1379 = vadd.xlane.f32.xlu1 %v3791_v14  ;;  %v1223_v23 = vadd.f32 %v2537_v24, %v3711_v25  ;;  %v1214_v35 = vpop.f32.mrb[13].mxu1 }
 0x1b5   : > { %v1215_v29 = vadd.f32 %v3711_v25, %v1214_v35  ;;  %v2538_v0 = vpop.f32.mrb[14].mxu1 }
 0x1b6   : > { %v3783_v41 = vpop.f32.mrb[20].mxu0  ;;  %v1307_v49 = vadd.f32 1.0, %v1223_v23  ;;  %v1226_v32 = vadd.f32 %v2538_v0, %v3711_v25  ;;  %v1217_v33 = vpop.f32.mrb[15].mxu1 }
 0x1b7   : > { %v3789_v12 = vpop.f32.mrb[21].mxu0  ;;  %1373 = vadd.xlane.f32.xlu0 %v3787_v48  ;;  %v1305_v38 = vadd.f32 1.0, %v1215_v29  ;;  %v1218_v50 = vadd.f32 %v3711_v25, %v1217_v33  ;;  %v719_v29 = vadd.f32 %v3783_v41, %v3706_v63 }
 0x1b8   : > { %v3793_v7 = vpop.f32.mrb[22].mxu0  ;;  %1375 = vadd.xlane.f32.xlu1 %v3796_v31  ;;  %v1308_v43 = vadd.f32 1.0, %v1226_v32  ;;  %v3815_v1 = vmul.f32 %v1307_v49, %v687_v6  ;;  %v711_v49 = vadd.f32 %v3706_v63, %v3789_v12 }
 0x1b9   : > { %v3798_v22 = vpop.f32.mrb[23].mxu0  ;;  %v1306_v9 = vadd.f32 1.0, %v1218_v50  ;;  %v3821_v57 = vmul.f32 %v1305_v38, %v679_v28  ;;  %v722_v38 = vadd.f32 %v3793_v7, %v3706_v63 }
 0x1ba   : > { %v3826_v2 = vmul.f32 %v1308_v43, %v690_v30  ;;  %v714_v12 = vadd.f32 %v3706_v63, %v3798_v22 }
 0x1bb   : > { %1385 = vadd.xlane.f32.xlu0 %v3815_v1  ;;  %v2541_v40 = vpop.f32.mrb[16].mxu1  ;;  %v3830_v58 = vmul.f32 %v1306_v9, %v682_v36 }
 0x1bc   : > { %v1239_v62 = vadd.f32 %v2541_v40, %v3711_v25  ;;  %v1230_v47 = vpop.f32.mrb[17].mxu1  ;;  %1387 = vadd.xlane.f32.xlu1 %v3826_v2 }
 0x1bd   : > { %v1231_v13 = vadd.f32 %v3711_v25, %v1230_v47  ;;  %v2542_v45 = vpop.f32.mrb[18].mxu1 }
 0x1be   : > { %v3813_v55 = vpop.f32.mrb[24].mxu0  ;;  %v1311_v16 = vadd.f32 1.0, %v1239_v62  ;;  %v1242_v10 = vadd.f32 %v2542_v45, %v3711_v25  ;;  %v1233_v17 = vpop.f32.mrb[19].mxu1 }
 0x1bf   : > { %v3817_v51 = vpop.f32.mrb[25].mxu0  ;;  %1381 = vadd.xlane.f32.xlu0 %v3821_v57  ;;  %v1309_v54 = vadd.f32 1.0, %v1231_v13  ;;  %v1234_v52 = vadd.f32 %v3711_v25, %v1233_v17  ;;  %v735_v13 = vadd.f32 %v3813_v55, %v3706_v63 }
 0x1c0   : > { %v3823_v20 = vpop.f32.mrb[26].mxu0  ;;  %v1312_v19 = vadd.f32 1.0, %v1242_v10  ;;  %1383 = vadd.xlane.f32.xlu1 %v3830_v58  ;;  %v3847_v60 = vmul.f32 %v1311_v16, %v703_v4  ;;  %v727_v22 = vadd.f32 %v3706_v63, %v3817_v51 }
 0x1c1   : > { %v3828_v26 = vpop.f32.mrb[27].mxu0  ;;  %v1310_v8 = vadd.f32 1.0, %v1234_v52  ;;  %v3853_v53 = vmul.f32 %v1309_v54, %v695_v21  ;;  %v738_v54 = vadd.f32 %v3823_v20, %v3706_v63 }
 0x1c2   : > { %v3856_v24 = vmul.f32 %v1312_v19, %v706_v3  ;;  %v730_v51 = vadd.f32 %v3706_v63, %v3828_v26 }
 0x1c3   : > { %1393 = vadd.xlane.f32.xlu0 %v3847_v60  ;;  %v2545_v35 = vpop.f32.mrb[20].mxu1  ;;  %v3863_v28 = vmul.f32 %v1310_v8, %v698_v44 }
 0x1c4   : > { %v1255_v61 = vadd.f32 %v2545_v35, %v3711_v25  ;;  %v1246_v0 = vpop.f32.mrb[21].mxu1  ;;  %1395 = vadd.xlane.f32.xlu1 %v3856_v24 }
 0x1c5   : > { %v1247_v30 = vadd.f32 %v3711_v25, %v1246_v0  ;;  %v2546_v32 = vpop.f32.mrb[22].mxu1 }
 0x1c6   : > { %v3844_v18 = vpop.f32.mrb[28].mxu0  ;;  %v1315_v33 = vadd.f32 1.0, %v1255_v61  ;;  %v1258_v50 = vadd.f32 %v2546_v32, %v3711_v25  ;;  %v1249_v43 = vpop.f32.mrb[23].mxu1 }
 0x1c7   : > { %v3849_v5 = vpop.f32.mrb[29].mxu0  ;;  %1389 = vadd.xlane.f32.xlu0 %v3853_v53  ;;  %v1313_v41 = vadd.f32 1.0, %v1247_v30  ;;  %v1250_v36 = vadd.f32 %v3711_v25, %v1249_v43 }
 0x1c8   : > { %v2506_v42 = vpop.f32.mrb[30].mxu0  ;;  %v1316_v9 = vadd.f32 1.0, %v1258_v50  ;;  %1391 = vadd.xlane.f32.xlu1 %v3863_v28  ;;  %v3878_v40 = vmul.f32 %v1315_v33, %v719_v29  ;;  %v743_v26 = vadd.f32 %v3706_v63, %v3849_v5 }
 0x1c9   : > { %v3859_v6 = vadd.f32 %v2506_v42, %v3706_v63  ;;  %v3861_v23 = vpop.f32.mrb[31].mxu0  ;;  %v1314_v4 = vadd.f32 1.0, %v1250_v36  ;;  %v3882_v62 = vmul.f32 %v1313_v41, %v711_v49  ;;  %v751_v49 = vadd.f32 %v3844_v18, %v3706_v63 }
 0x1ca   : > { %v3885_v7 = vmul.f32 %v1316_v9, %v722_v38  ;;  %v746_v5 = vadd.f32 %v3706_v63, %v3861_v23 }
 0x1cb   : > { %1401 = vadd.xlane.f32.xlu0 %v3878_v40  ;;  %v3887_v47 = vmul.f32 %v1314_v4, %v714_v12  ;;  %v2549_v21 = vpop.f32.mrb[24].mxu1 }
 0x1cc   : > { %1403 = vadd.xlane.f32.xlu1 %v3885_v7  ;;  %v1271_v45 = vadd.f32 %v2549_v21, %v3711_v25  ;;  %v1262_v16 = vpop.f32.mrb[25].mxu1 }
 0x1cd   : > { %v1263_v3 = vadd.f32 %v3711_v25, %v1262_v16  ;;  %v2550_v10 = vpop.f32.mrb[26].mxu1 }
 0x1ce   : > { %v1319_v17 = vadd.f32 1.0, %v1271_v45  ;;  %v1274_v52 = vadd.f32 %v2550_v10, %v3711_v25  ;;  %v1265_v19 = vpop.f32.mrb[27].mxu1 }
 0x1cf   : > { %1397 = vadd.xlane.f32.xlu0 %v3882_v62  ;;  %v1317_v44 = vadd.f32 1.0, %v1263_v3  ;;  %v1266_v55 = vadd.f32 %v3711_v25, %v1265_v19 }
 0x1d0   : > { %1399 = vadd.xlane.f32.xlu1 %v3887_v47  ;;  %v1320_v8 = vadd.f32 1.0, %v1274_v52  ;;  %v3902_v42 = vmul.f32 %v1319_v17, %v735_v13 }
 0x1d1   : > { %v1318_v35 = vadd.f32 1.0, %v1266_v55  ;;  %v3906_v29 = vmul.f32 %v1317_v44, %v727_v22 }
 0x1d2   : > { %v3909_v20 = vmul.f32 %v1320_v8, %v738_v54 }
 0x1d3   : > { %1409 = vadd.xlane.f32.xlu0 %v3902_v42  ;;  %v2553_v61 = vpop.f32.mrb[28].mxu1  ;;  %v3911_v0 = vmul.f32 %v1318_v35, %v730_v51 }
 0x1d4   : > { %v1287_v30 = vadd.f32 %v2553_v61, %v3711_v25  ;;  %v1278_v32 = vpop.f32.mrb[29].mxu1  ;;  %1411 = vadd.xlane.f32.xlu1 %v3909_v20 }
 0x1d5   : > { %v1279_v33 = vadd.f32 %v3711_v25, %v1278_v32  ;;  %v2554_v38 = vpop.f32.mrb[30].mxu1 }
 0x1d6   : > { %v1323_v50 = vadd.f32 1.0, %v1287_v30  ;;  %v1290_v43 = vadd.f32 %v2554_v38, %v3711_v25  ;;  %v1281_v41 = vpop.f32.mrb[31].mxu1 }
 0x1d7   : > { %1405 = vadd.xlane.f32.xlu0 %v3906_v29  ;;  %v1321_v36 = vadd.f32 1.0, %v1279_v33  ;;  %v1282_v18 = vadd.f32 %v3711_v25, %v1281_v41  ;;  %v1485_v25 = vlaneseq }
 0x1d8   : > { %v1324_v9 = vadd.f32 1.0, %v1290_v43  ;;  %1407 = vadd.xlane.f32.xlu1 %v3911_v0  ;;  %v3924_v12 = vmul.f32 %v1323_v50, %v751_v49 }
 0x1d9   : > { %v1322_v4 = vadd.f32 1.0, %v1282_v18  ;;  %v3928_v21 = vmul.f32 %v1321_v36, %v743_v26  ;;  %v3939_v16 = vand.u32 127, %v1485_v25 }
 0x1da   : > { %v3931_v13 = vmul.f32 %v1324_v9, %v3859_v6 }
 0x1db   : > { %1413 = vadd.xlane.f32.xlu0 %v3928_v21  ;;  %v3934_v45 = vmul.f32 %v1322_v4, %v746_v5  ;;  %vm1487_vm0 = vcmp.lt.s32.totalorder %v3939_v16, 32 }
 0x1dd   : > { %1415 = vadd.xlane.f32.xlu1 %v3934_v45 }
 0x1df   : > { %1417 = vadd.xlane.f32.xlu0 %v3924_v12 }
 0x1e1   : > { %1419 = vadd.xlane.f32.xlu1 %v3931_v13 }
 0x22f   : > { %v1362_v63 = vpop.xlane.xlu1 %1361 }
 0x230   : > { %v1423_v23 = vmul.f32 0.03125, %v1362_v63  ;;  %v1358_v22 = vpop.xlane.xlu0 %1357 }
 0x231   : > { %v1421_v3 = vmul.f32 0.03125, %v1358_v22 }
 0x232   : > { %v3943_v6 = vsub.f32 %v3724_v11, %v1423_v23 }
 0x233   : > { %v3946_v10 = vsub.f32 %v3729_v37, %v1421_v3  ;;  %v1364_v17 = vpop.xlane.xlu1 %1363 }
 0x234   : > { %v1424_v54 = vmul.f32 0.03125, %v1364_v17  ;;  %v1360_v52 = vpop.xlane.xlu0 %1359  ;;  %v1490_v19 = vsel %vm1487_vm0, %v3943_v6, 0.0 }
 0x235   : > { %v1422_v44 = vmul.f32 0.03125, %v1360_v52  ;;  %v1522_v55 = vmul.f32 %v1490_v19, %v1490_v19  ;;  %v1488_v11 = vsel %vm1487_vm0, %v3946_v10, 0.0 }
 0x236   : > { %v3952_v8 = vsub.f32 %v3734_v56, %v1424_v54  ;;  %v1520_v32 = vmul.f32 %v1488_v11, %v1488_v11 }
 0x237   : > { %v3958_v51 = vsub.f32 %v3739_v46, %v1422_v44  ;;  %1556 = vadd.xlane.f32.xlu0 %v1522_v55 }
 0x238   : > { %v1370_v37 = vpop.xlane.xlu0 %1369  ;;  %v1491_v35 = vsel %vm1487_vm0, %v3952_v8, 0.0 }
 0x239   : > { %v1427_v61 = vmul.f32 0.03125, %v1370_v37  ;;  %v1372_v49 = vpop.xlane.xlu1 %1371  ;;  %v1523_v30 = vmul.f32 %v1491_v35, %v1491_v35  ;;  %v1489_v56 = vsel %vm1487_vm0, %v3958_v51, 0.0 }
 0x23a   : > { %v1428_v26 = vmul.f32 0.03125, %v1372_v49  ;;  %v1521_v41 = vmul.f32 %v1489_v56, %v1489_v56 }
 0x23b   : > { %v3967_v33 = vsub.f32 %v3752_v34, %v1427_v61  ;;  %1558 = vadd.xlane.f32.xlu1 %v1523_v30  ;;  %1552 = vadd.xlane.f32.xlu0 %v1520_v32 }
 0x23c   : > { %v3970_v46 = vsub.f32 %v3761_v15, %v1428_v26  ;;  %v1366_v38 = vpop.xlane.xlu0 %1365 }
 0x23d   : > { %v1425_v50 = vmul.f32 0.03125, %v1366_v38  ;;  %v1368_v43 = vpop.xlane.xlu1 %1367  ;;  %v1494_v36 = vsel %vm1487_vm0, %v3967_v33, 0.0 }
 0x23e   : > { %v1426_v18 = vmul.f32 0.03125, %v1368_v43  ;;  %v1526_v9 = vmul.f32 %v1494_v36, %v1494_v36  ;;  %v1495_v34 = vsel %vm1487_vm0, %v3970_v46, 0.0 }
 0x23f   : > { %v3979_v5 = vsub.f32 %v3757_v59, %v1425_v50  ;;  %1554 = vadd.xlane.f32.xlu1 %v1521_v41  ;;  %v1527_v23 = vmul.f32 %v1495_v34, %v1495_v34 }
 0x240   : > { %v3982_v15 = vsub.f32 %v3766_v39, %v1426_v18  ;;  %1564 = vadd.xlane.f32.xlu0 %v1526_v9  ;;  %v1378_v4 = vpop.xlane.xlu0 %1377 }
 0x241   : > { %v1431_v25 = vmul.f32 0.03125, %v1378_v4  ;;  %v1380_v63 = vpop.xlane.xlu1 %1379  ;;  %v1492_v22 = vsel %vm1487_vm0, %v3979_v5, 0.0 }
 0x242   : > { %v1432_v3 = vmul.f32 0.03125, %v1380_v63  ;;  %v1524_v17 = vmul.f32 %v1492_v22, %v1492_v22  ;;  %v1493_v59 = vsel %vm1487_vm0, %v3982_v15, 0.0 }
 0x243   : > { %v3991_v54 = vsub.f32 %v3781_v27, %v1431_v25  ;;  %1566 = vadd.xlane.f32.xlu1 %v1527_v23  ;;  %v1525_v55 = vmul.f32 %v1493_v59, %v1493_v59 }
 0x244   : > { %v3994_v39 = vsub.f32 %v3791_v14, %v1432_v3  ;;  %1560 = vadd.xlane.f32.xlu0 %v1524_v17  ;;  %v1374_v52 = vpop.xlane.xlu0 %1373 }
 0x245   : > { %v1429_v19 = vmul.f32 0.03125, %v1374_v52  ;;  %v1376_v44 = vpop.xlane.xlu1 %1375  ;;  %v1498_v11 = vsel %vm1487_vm0, %v3991_v54, 0.0 }
 0x246   : > { %v1430_v37 = vmul.f32 0.03125, %v1376_v44  ;;  %v1530_v35 = vmul.f32 %v1498_v11, %v1498_v11  ;;  %v1499_v27 = vsel %vm1487_vm0, %v3994_v39, 0.0 }
 0x247   : > { %v4003_v61 = vsub.f32 %v3787_v48, %v1429_v19  ;;  %1562 = vadd.xlane.f32.xlu1 %v1525_v55  ;;  %v1531_v32 = vmul.f32 %v1499_v27, %v1499_v27 }
 0x248   : > { %v4006_v14 = vsub.f32 %v3796_v31, %v1430_v37  ;;  %1572 = vadd.xlane.f32.xlu0 %v1530_v35  ;;  %v1386_v49 = vpop.xlane.xlu0 %1385 }
 0x249   : > { %v1435_v30 = vmul.f32 0.03125, %v1386_v49  ;;  %v1496_v26 = vsel %vm1487_vm0, %v4003_v61, 0.0  ;;  %v1388_v56 = vpop.xlane.xlu1 %1387 }
 0x24a   : > { %v1528_v38 = vmul.f32 %v1496_v26, %v1496_v26  ;;  %v1497_v50 = vsel %vm1487_vm0, %v4006_v14, 0.0  ;;  %v1436_v43 = vmul.f32 0.03125, %v1388_v56 }
 0x24b   : > { %v4015_v48 = vsub.f32 %v3815_v1, %v1435_v30  ;;  %1574 = vadd.xlane.f32.xlu1 %v1531_v32  ;;  %v1529_v18 = vmul.f32 %v1497_v50, %v1497_v50 }
 0x24c   : > { %1568 = vadd.xlane.f32.xlu0 %v1528_v38  ;;  %v1382_v31 = vpop.xlane.xlu0 %1381  ;;  %v4018_v41 = vsub.f32 %v3826_v2, %v1436_v43 }
 0x24d   : > { %v1433_v36 = vmul.f32 0.03125, %v1382_v31  ;;  %v1502_v9 = vsel %vm1487_vm0, %v4015_v48, 0.0  ;;  %v1384_v34 = vpop.xlane.xlu1 %1383 }
 0x24e   : > { %v1534_v4 = vmul.f32 %v1502_v9, %v1502_v9  ;;  %v1434_v1 = vmul.f32 0.03125, %v1384_v34  ;;  %v1503_v63 = vsel %vm1487_vm0, %v4018_v41, 0.0 }
 0x24f   : > { %v4024_v25 = vsub.f32 %v3821_v57, %v1433_v36  ;;  %1570 = vadd.xlane.f32.xlu1 %v1529_v18  ;;  %v1535_v3 = vmul.f32 %v1503_v63, %v1503_v63 }
 0x250   : > { %1580 = vadd.xlane.f32.xlu0 %v1534_v4  ;;  %v1394_v2 = vpop.xlane.xlu0 %1393  ;;  %v4030_v23 = vsub.f32 %v3830_v58, %v1434_v1 }
 0x251   : > { %v1439_v22 = vmul.f32 0.03125, %v1394_v2  ;;  %v1500_v17 = vsel %vm1487_vm0, %v4024_v25, 0.0  ;;  %v1396_v59 = vpop.xlane.xlu1 %1395 }
 0x252   : > { %v1532_v57 = vmul.f32 %v1500_v17, %v1500_v17  ;;  %v1440_v19 = vmul.f32 0.03125, %v1396_v59  ;;  %v1501_v44 = vsel %vm1487_vm0, %v4030_v23, 0.0 }
 0x253   : > { %v4036_v52 = vsub.f32 %v3847_v60, %v1439_v22  ;;  %1582 = vadd.xlane.f32.xlu1 %v1535_v3  ;;  %v1533_v37 = vmul.f32 %v1501_v44, %v1501_v44 }
 0x254   : > { %1576 = vadd.xlane.f32.xlu0 %v1532_v57  ;;  %v1390_v58 = vpop.xlane.xlu0 %1389  ;;  %v4042_v55 = vsub.f32 %v3856_v24, %v1440_v19 }
 0x255   : > { %v1437_v11 = vmul.f32 0.03125, %v1390_v58  ;;  %v1506_v35 = vsel %vm1487_vm0, %v4036_v52, 0.0  ;;  %v1392_v27 = vpop.xlane.xlu1 %1391 }
 0x256   : > { %v1538_v60 = vmul.f32 %v1506_v35, %v1506_v35  ;;  %v1438_v30 = vmul.f32 0.03125, %v1392_v27  ;;  %v1507_v32 = vsel %vm1487_vm0, %v4042_v55, 0.0 }
 0x257   : > { %v4048_v49 = vsub.f32 %v3853_v53, %v1437_v11  ;;  %1578 = vadd.xlane.f32.xlu1 %v1533_v37  ;;  %v1539_v38 = vmul.f32 %v1507_v32, %v1507_v32 }
 0x258   : > { %1588 = vadd.xlane.f32.xlu0 %v1538_v60  ;;  %v1402_v24 = vpop.xlane.xlu0 %1401  ;;  %v4054_v26 = vsub.f32 %v3863_v28, %v1438_v30 }
 0x259   : > { %v1443_v56 = vmul.f32 0.03125, %v1402_v24  ;;  %v1504_v50 = vsel %vm1487_vm0, %v4048_v49, 0.0  ;;  %v1404_v43 = vpop.xlane.xlu1 %1403 }
 0x25a   : > { %v1536_v53 = vmul.f32 %v1504_v50, %v1504_v50  ;;  %v1444_v36 = vmul.f32 0.03125, %v1404_v43  ;;  %v1505_v18 = vsel %vm1487_vm0, %v4054_v26, 0.0 }
 0x25b   : > { %v4060_v31 = vsub.f32 %v3878_v40, %v1443_v56  ;;  %1590 = vadd.xlane.f32.xlu1 %v1539_v38  ;;  %v1537_v4 = vmul.f32 %v1505_v18, %v1505_v18 }
 0x25c   : > { %1584 = vadd.xlane.f32.xlu0 %v1536_v53  ;;  %v1398_v28 = vpop.xlane.xlu0 %1397  ;;  %v4066_v9 = vsub.f32 %v3885_v7, %v1444_v36 }
 0x25d   : > { %v1441_v34 = vmul.f32 0.03125, %v1398_v28  ;;  %v1510_v1 = vsel %vm1487_vm0, %v4060_v31, 0.0  ;;  %v1400_v63 = vpop.xlane.xlu1 %1399 }
 0x25e   : > { %v1542_v40 = vmul.f32 %v1510_v1, %v1510_v1  ;;  %v1442_v22 = vmul.f32 0.03125, %v1400_v63  ;;  %v1511_v3 = vsel %vm1487_vm0, %v4066_v9, 0.0 }
 0x25f   : > { %v4072_v2 = vsub.f32 %v3882_v62, %v1441_v34  ;;  %1586 = vadd.xlane.f32.xlu1 %v1537_v4  ;;  %v1543_v59 = vmul.f32 %v1511_v3, %v1511_v3 }
 0x260   : > { %1596 = vadd.xlane.f32.xlu0 %v1542_v40  ;;  %v4078_v7 = vsub.f32 %v3887_v47, %v1442_v22  ;;  %v1410_v17 = vpop.xlane.xlu0 %1409 }
 0x261   : > { %v1508_v57 = vsel %vm1487_vm0, %v4072_v2, 0.0  ;;  %v1447_v19 = vmul.f32 0.03125, %v1410_v17  ;;  %v1412_v62 = vpop.xlane.xlu1 %1411 }
 0x262   : > { %v1540_v44 = vmul.f32 %v1508_v57, %v1508_v57  ;;  %v1509_v58 = vsel %vm1487_vm0, %v4078_v7, 0.0  ;;  %v1448_v37 = vmul.f32 0.03125, %v1412_v62 }
 0x263   : > { %1598 = vadd.xlane.f32.xlu1 %v1543_v59  ;;  %v4087_v11 = vsub.f32 %v3902_v42, %v1447_v19  ;;  %v1541_v35 = vmul.f32 %v1509_v58, %v1509_v58 }
 0x264   : > { %1592 = vadd.xlane.f32.xlu0 %v1540_v44  ;;  %v1406_v47 = vpop.xlane.xlu0 %1405  ;;  %v4090_v27 = vsub.f32 %v3909_v20, %v1448_v37 }
 0x265   : > { %v1445_v60 = vmul.f32 0.03125, %v1406_v47  ;;  %v1514_v30 = vsel %vm1487_vm0, %v4087_v11, 0.0  ;;  %v1408_v32 = vpop.xlane.xlu1 %1407 }
 0x266   : > { %v1546_v24 = vmul.f32 %v1514_v30, %v1514_v30  ;;  %v1446_v42 = vmul.f32 0.03125, %v1408_v32  ;;  %v1515_v38 = vsel %vm1487_vm0, %v4090_v27, 0.0 }
 0x267   : > { %1594 = vadd.xlane.f32.xlu1 %v1541_v35  ;;  %v4096_v56 = vsub.f32 %v3906_v29, %v1445_v60  ;;  %v1547_v50 = vmul.f32 %v1515_v38, %v1515_v38 }
 0x268   : > { %1604 = vadd.xlane.f32.xlu0 %v1546_v24  ;;  %v4102_v20 = vsub.f32 %v3911_v0, %v1446_v42  ;;  %v1414_v43 = vpop.xlane.xlu0 %1413 }
 0x269   : > { %v1512_v53 = vsel %vm1487_vm0, %v4096_v56, 0.0  ;;  %v1449_v36 = vmul.f32 0.03125, %v1414_v43 }
 0x26a   : > { %v1544_v18 = vmul.f32 %v1512_v53, %v1512_v53  ;;  %v1416_v29 = vpop.xlane.xlu1 %1415  ;;  %v1513_v28 = vsel %vm1487_vm0, %v4102_v20, 0.0 }
 0x26b   : > { %1606 = vadd.xlane.f32.xlu1 %v1547_v50  ;;  %v4111_v34 = vsub.f32 %v3928_v21, %v1449_v36  ;;  %v1450_v4 = vmul.f32 0.03125, %v1416_v29  ;;  %v1545_v0 = vmul.f32 %v1513_v28, %v1513_v28 }
 0x26c   : > { %1600 = vadd.xlane.f32.xlu0 %v1544_v18  ;;  %v1418_v1 = vpop.xlane.xlu0 %1417 }
 0x26d   : > { %v4114_v63 = vsub.f32 %v3934_v45, %v1450_v4  ;;  %v1451_v40 = vmul.f32 0.03125, %v1418_v1  ;;  %v1516_v22 = vsel %vm1487_vm0, %v4111_v34, 0.0  ;;  %v4137_v1 = vld [vmem:[%s4475_s6] ss:$0 sm:$0xff] }
 0x26e   : > { %v1420_v3 = vpop.xlane.xlu1 %1419  ;;  %v1548_v17 = vmul.f32 %v1516_v22, %v1516_v22 }
 0x26f   : > { %1602 = vadd.xlane.f32.xlu1 %v1545_v0  ;;  %v4120_v59 = vsub.f32 %v3924_v12, %v1451_v40  ;;  %v1452_v21 = vmul.f32 0.03125, %v1420_v3  ;;  %v1517_v57 = vsel %vm1487_vm0, %v4114_v63, 0.0 }
 0x270   : > { %1608 = vadd.xlane.f32.xlu0 %v1548_v17  ;;  %v1549_v19 = vmul.f32 %v1517_v57, %v1517_v57 }
 0x271   : > { %v4126_v45 = vsub.f32 %v3931_v13, %v1452_v21  ;;  %v1518_v44 = vsel %vm1487_vm0, %v4120_v59, 0.0  ;;  %v4143_v21 = vld [vmem:[%s4476_s7] ss:$0 sm:$0xff] }
 0x272   : > { %v1550_v62 = vmul.f32 %v1518_v44, %v1518_v44 }
 0x273   : > { %1610 = vadd.xlane.f32.xlu1 %v1549_v19  ;;  %v1519_v12 = vsel %vm1487_vm0, %v4126_v45, 0.0 }
 0x274   : > { %1612 = vadd.xlane.f32.xlu0 %v1550_v62  ;;  %v1551_v58 = vmul.f32 %v1519_v12, %v1519_v12 }
 0x277   : > { %1614 = vadd.xlane.f32.xlu1 %v1551_v58 }
 0x2c4   : > { %v1557_v37 = vpop.xlane.xlu0 %1556 }
 0x2c5   : > { %v1618_v47 = vmul.f32 0.03125, %v1557_v37 }
 0x2c7   : > { %v1650_v35 = vadd.f32 1e-05, %v1618_v47 }
 0x2c8   : > { %v1559_v60 = vpop.xlane.xlu1 %1558  ;;  %v1553_v30 = vpop.xlane.xlu0 %1552 }
 0x2c9   : > { %2791 = vrsqrt.f32 %v1650_v35  ;;  %v1619_v13 = vmul.f32 0.03125, %v1559_v60  ;;  %v1616_v32 = vmul.f32 0.03125, %v1553_v30 }
 0x2cb   : > { %v1651_v24 = vadd.f32 1e-05, %v1619_v13  ;;  %v1648_v42 = vadd.f32 1e-05, %v1616_v32 }
 0x2cc   : > { %v1555_v38 = vpop.xlane.xlu1 %1554 }
 0x2cd   : > { %2793 = vrsqrt.f32 %v1651_v24  ;;  %v1617_v50 = vmul.f32 0.03125, %v1555_v38  ;;  %v1565_v43 = vpop.xlane.xlu0 %1564 }
 0x2ce   : > { %2795 = vrsqrt.f32 %v1648_v42  ;;  %v1622_v16 = vmul.f32 0.03125, %v1565_v43 }
 0x2cf   : > { %v1649_v53 = vadd.f32 1e-05, %v1617_v50 }
 0x2d0   : > { %v1654_v36 = vadd.f32 1e-05, %v1622_v16  ;;  %v1567_v18 = vpop.xlane.xlu1 %1566 }
 0x2d1   : > { %2797 = vrsqrt.f32 %v1649_v53  ;;  %v1623_v29 = vmul.f32 0.03125, %v1567_v18  ;;  %v1561_v28 = vpop.xlane.xlu0 %1560 }
 0x2d2   : > { %2799 = vrsqrt.f32 %v1654_v36  ;;  %v1620_v4 = vmul.f32 0.03125, %v1561_v28 }
 0x2d3   : > { %v2792_v0 = vpop.eup %2791  ;;  %v1655_v40 = vadd.f32 1e-05, %v1623_v29 }
 0x2d4   : > { %v1714_v22 = vmul.f32 %v2792_v0, %v3943_v6  ;;  %v1652_v3 = vadd.f32 1e-05, %v1620_v4  ;;  %v1563_v17 = vpop.xlane.xlu1 %1562 }
 0x2d5   : > { %2801 = vrsqrt.f32 %v1655_v40  ;;  %v1621_v57 = vmul.f32 0.03125, %v1563_v17  ;;  %v1573_v19 = vpop.xlane.xlu0 %1572 }
 0x2d6   : > { %v1753_v44 = vmul.f32 %v4137_v1, %v1714_v22  ;;  %2803 = vrsqrt.f32 %v1652_v3  ;;  %v1626_v62 = vmul.f32 0.03125, %v1573_v19 }
 0x2d7   : > { %v2794_v12 = vpop.eup %2793  ;;  %v1653_v58 = vadd.f32 1e-05, %v1621_v57 }
 0x2d8   : > { %v2796_v37 = vpop.eup %2795  ;;  %v4147_v47 = vadd.f32 %v4143_v21, %v1753_v44  ;;  %v1715_v6 = vmul.f32 %v2794_v12, %v3952_v8  ;;  %v1658_v35 = vadd.f32 1e-05, %v1626_v62  ;;  %v1575_v60 = vpop.xlane.xlu1 %1574 }
 0x2d9   : > { %v1712_v30 = vmul.f32 %v2796_v37, %v3946_v10  ;;  %2805 = vrsqrt.f32 %v1653_v58  ;;  %v1627_v13 = vmul.f32 0.03125, %v1575_v60  ;;  %v1569_v32 = vpop.xlane.xlu0 %1568 }
 0x2da   : > { %v2294_v24 = vmul.f32 -1.442695, %v4147_v47  ;;  %v1754_v42 = vmul.f32 %v4137_v1, %v1715_v6  ;;  %2807 = vrsqrt.f32 %v1658_v35  ;;  %v1624_v38 = vmul.f32 0.03125, %v1569_v32 }
 0x2db   : > { %v2798_v50 = vpop.eup %2797  ;;  %v1751_v43 = vmul.f32 %v4137_v1, %v1712_v30  ;;  %v1659_v16 = vadd.f32 1e-05, %v1627_v13 }
 0x2dc   : > { %v2800_v53 = vpop.eup %2799  ;;  %2809 = vpow2.f32 %v2294_v24  ;;  %v4155_v8 = vadd.f32 %v4143_v21, %v1754_v42  ;;  %v1713_v10 = vmul.f32 %v2798_v50, %v3958_v51  ;;  %v1656_v36 = vadd.f32 1e-05, %v1624_v38  ;;  %v1571_v18 = vpop.xlane.xlu1 %1570 }
 0x2dd   : > { %v4159_v29 = vadd.f32 %v4143_v21, %v1751_v43  ;;  %v1718_v28 = vmul.f32 %v2800_v53, %v3967_v33  ;;  %2811 = vrsqrt.f32 %v1659_v16  ;;  %v1625_v4 = vmul.f32 0.03125, %v1571_v18  ;;  %v1581_v0 = vpop.xlane.xlu0 %1580 }
 0x2de   : > { %v2295_v40 = vmul.f32 -1.442695, %v4155_v8  ;;  %v1752_v22 = vmul.f32 %v4137_v1, %v1713_v10  ;;  %2813 = vrsqrt.f32 %v1656_v36  ;;  %v1630_v3 = vmul.f32 0.03125, %v1581_v0 }
 0x2df   : > { %v2802_v17 = vpop.eup %2801  ;;  %v2292_v57 = vmul.f32 -1.442695, %v4159_v29  ;;  %v1757_v51 = vmul.f32 %v4137_v1, %v1718_v28  ;;  %v1657_v19 = vadd.f32 1e-05, %v1625_v4 }
 0x2e0   : > { %v2804_v44 = vpop.eup %2803  ;;  %2815 = vpow2.f32 %v2295_v40  ;;  %v4167_v62 = vadd.f32 %v4143_v21, %v1752_v22  ;;  %v1719_v33 = vmul.f32 %v2802_v17, %v3970_v46  ;;  %v1662_v12 = vadd.f32 1e-05, %v1630_v3  ;;  %v1583_v58 = vpop.xlane.xlu1 %1582 }
 0x2e1   : > { %2817 = vpow2.f32 %v2292_v57  ;;  %v4171_v37 = vadd.f32 %v4143_v21, %v1757_v51  ;;  %v1716_v6 = vmul.f32 %v2804_v44, %v3979_v5  ;;  %v1631_v35 = vmul.f32 0.03125, %v1583_v58  ;;  %v1577_v60 = vpop.xlane.xlu0 %1576 }
 0x2e2   : > { %v2293_v30 = vmul.f32 -1.442695, %v4167_v62  ;;  %v1758_v13 = vmul.f32 %v4137_v1, %v1719_v33  ;;  %2819 = vrsqrt.f32 %v1657_v19  ;;  %v1628_v32 = vmul.f32 0.03125, %v1577_v60 }
 0x2e3   : > { %v2806_v24 = vpop.eup %2805  ;;  %v2298_v42 = vmul.f32 -1.442695, %v4171_v37  ;;  %v1755_v46 = vmul.f32 %v4137_v1, %v1716_v6  ;;  %2821 = vrsqrt.f32 %v1662_v12  ;;  %v1663_v38 = vadd.f32 1e-05, %v1631_v35 }
 0x2e4   : > { %v2808_v50 = vpop.eup %2807  ;;  %2823 = vpow2.f32 %v2293_v30  ;;  %v4179_v43 = vadd.f32 %v4143_v21, %v1758_v13  ;;  %v1717_v5 = vmul.f32 %v2806_v24, %v3982_v15  ;;  %v1660_v16 = vadd.f32 1e-05, %v1628_v32  ;;  %v1579_v53 = vpop.xlane.xlu1 %1578 }
 0x2e5   : > { %2825 = vpow2.f32 %v2298_v42  ;;  %v4183_v10 = vadd.f32 %v4143_v21, %v1755_v46  ;;  %v1722_v36 = vmul.f32 %v2808_v50, %v3991_v54  ;;  %v1629_v18 = vmul.f32 0.03125, %v1579_v53  ;;  %v1589_v28 = vpop.xlane.xlu0 %1588 }
 0x2e6   : > { %v2810_v4 = vpop.eup %2809  ;;  %v2299_v0 = vmul.f32 -1.442695, %v4179_v43  ;;  %v1756_v40 = vmul.f32 %v4137_v1, %v1717_v5  ;;  %2827 = vrsqrt.f32 %v1663_v38  ;;  %v1634_v46 = vmul.f32 0.03125, %v1589_v28 }
 0x2e7   : > { %v2812_v22 = vpop.eup %2811  ;;  %v1920_v3 = vadd.f32 1.0, %v2810_v4  ;;  %v2296_v15 = vmul.f32 -1.442695, %v4183_v10  ;;  %v1761_v17 = vmul.f32 %v4137_v1, %v1722_v36  ;;  %2829 = vrsqrt.f32 %v1660_v16 }
 0x2e8   : > { %v2814_v57 = vpop.eup %2813  ;;  %2831 = vpow2.f32 %v2299_v0  ;;  %v4191_v51 = vadd.f32 %v4143_v21, %v1756_v40  ;;  %v1723_v54 = vmul.f32 %v2812_v22, %v3994_v39  ;;  %v1661_v19 = vadd.f32 1e-05, %v1629_v18  ;;  %v4194_v44 = vpop.xlane.xlu1 %1590 }
 0x2e9   : > { %2833 = vrcp.f32 %v1920_v3  ;;  %v4197_v33 = vadd.f32 %v4143_v21, %v1761_v17  ;;  %v1720_v12 = vmul.f32 %v2814_v57, %v4003_v61  ;;  %v4200_v58 = vpop.xlane.xlu0 %1584  ;;  %v1666_v17 = vadd.f32 1e-05, %v1634_v46 }
 0x2ea   : > { %v2816_v6 = vpop.eup %2815  ;;  %2835 = vpow2.f32 %v2296_v15  ;;  %v2297_v35 = vmul.f32 -1.442695, %v4191_v51  ;;  %v1762_v60 = vmul.f32 %v4137_v1, %v1723_v54 }
 0x2eb   : > { %v2818_v30 = vpop.eup %2817  ;;  %v1921_v13 = vadd.f32 1.0, %v2816_v6  ;;  %v2302_v39 = vmul.f32 -1.442695, %v4197_v33  ;;  %v1759_v32 = vmul.f32 %v4137_v1, %v1720_v12  ;;  %2837 = vrsqrt.f32 %v1661_v19 }
 0x2ec   : > { %v2820_v24 = vpop.eup %2819  ;;  %v1918_v42 = vadd.f32 1.0, %v2818_v30  ;;  %2839 = vpow2.f32 %v2297_v35  ;;  %v4207_v61 = vadd.f32 %v4143_v21, %v1762_v60  ;;  %v4213_v16 = vpop.xlane.xlu1 %1586 }
 0x2ed   : > { %v2822_v38 = vpop.eup %2821  ;;  %2841 = vrcp.f32 %v1921_v13  ;;  %v4210_v50 = vadd.f32 %v4143_v21, %v1759_v32  ;;  %v1721_v5 = vmul.f32 %v2820_v24, %v4006_v14  ;;  %v4217_v4 = vpop.xlane.xlu0 %1596 }
 0x2ee   : > { %v2824_v53 = vpop.eup %2823  ;;  %2843 = vrcp.f32 %v1918_v42  ;;  %v2303_v36 = vmul.f32 -1.442695, %v4207_v61  ;;  %v1726_v18 = vmul.f32 %v2822_v38, %v4015_v48 }
 0x2ef   : > { %v2826_v0 = vpop.eup %2825  ;;  %v1919_v28 = vadd.f32 1.0, %v2824_v53  ;;  %2845 = vpow2.f32 %v2302_v39  ;;  %v2300_v40 = vmul.f32 -1.442695, %v4210_v50  ;;  %v1760_v22 = vmul.f32 %v4137_v1, %v1721_v5 }
 0x2f0   : > { %v2828_v3 = vpop.eup %2827  ;;  %v1924_v14 = vadd.f32 1.0, %v2826_v0  ;;  %2847 = vpow2.f32 %v2303_v36  ;;  %v1765_v15 = vmul.f32 %v4137_v1, %v1726_v18  ;;  %v1599_v39 = vpop.xlane.xlu1 %1598 }
 0x2f1   : > { %v2830_v57 = vpop.eup %2829  ;;  %2849 = vrcp.f32 %v1919_v28  ;;  %v4224_v48 = vadd.f32 %v4143_v21, %v1760_v22  ;;  %v1727_v54 = vmul.f32 %v2828_v3, %v4018_v41  ;;  %v4236_v46 = vpop.xlane.xlu0 %1592 }
 0x2f2   : > { %v2832_v19 = vpop.eup %2831  ;;  %2851 = vrcp.f32 %v1924_v14  ;;  %v4228_v12 = vadd.f32 %v4143_v21, %v1765_v15  ;;  %v1724_v6 = vmul.f32 %v2830_v57, %v4024_v25  ;;  %v1632_v57 = vmul.f32 0.03125, %v4200_v58 }
 0x2f3   : > { %v2834_v35 = vpop.eup %2833  ;;  %v1925_v60 = vadd.f32 1.0, %v2832_v19  ;;  %2853 = vpow2.f32 %v2300_v40  ;;  %v2301_v30 = vmul.f32 -1.442695, %v4224_v48  ;;  %v1766_v13 = vmul.f32 %v4137_v1, %v1727_v54 }
 0x2f4   : > { %v2836_v32 = vpop.eup %2835  ;;  %v2016_v24 = vmul.f32 %v2834_v35, %v4147_v47  ;;  %v2306_v41 = vmul.f32 -1.442695, %v4228_v12  ;;  %v1763_v42 = vmul.f32 %v4137_v1, %v1724_v6  ;;  %2855 = vrsqrt.f32 %v1666_v17  ;;  %v1595_v54 = vpop.xlane.xlu1 %1594 }
 0x2f5   : > { %v2838_v38 = vpop.eup %2837  ;;  %2857 = vrcp.f32 %v1925_v60  ;;  %v1922_v25 = vadd.f32 1.0, %v2836_v32  ;;  %v4239_v5 = vadd.f32 %v4143_v21, %v1766_v13  ;;  %v1635_v40 = vmul.f32 0.03125, %v4194_v44  ;;  %v1605_v35 = vpop.xlane.xlu0 %1604 }
 0x2f6   : > { %v2840_v53 = vpop.eup %2839  ;;  %2048 = vst [vmem:[%s4241_s21 + $0x10] sm:$0xff] %v2016_v24  ;;  %2859 = vpow2.f32 %v2301_v30  ;;  %v4245_v47 = vadd.f32 %v4143_v21, %v1763_v42  ;;  %v1725_v36 = vmul.f32 %v2838_v38, %v4030_v23  ;;  %v1638_v24 = vmul.f32 0.03125, %v4217_v4 }
 0x2f7   : > { %v2842_v18 = vpop.eup %2841  ;;  %2861 = vrcp.f32 %v1922_v25  ;;  %v1923_v0 = vadd.f32 1.0, %v2840_v53  ;;  %v2307_v28 = vmul.f32 -1.442695, %v4239_v5 }
 0x2f8   : > { %v2844_v22 = vpop.eup %2843  ;;  %v2017_v3 = vmul.f32 %v2842_v18, %v4155_v8  ;;  %2863 = vpow2.f32 %v2306_v41  ;;  %v2304_v14 = vmul.f32 -1.442695, %v4245_v47  ;;  %v1764_v15 = vmul.f32 %v4137_v1, %v1725_v36 }
 0x2f9   : > { %v2846_v17 = vpop.eup %2845  ;;  %v2014_v23 = vmul.f32 %v2844_v22, %v4159_v29  ;;  %2865 = vrcp.f32 %v1923_v0  ;;  %v1633_v8 = vmul.f32 0.03125, %v4213_v16  ;;  %v1667_v29 = vadd.f32 1e-05, %v1635_v40  ;;  %v1607_v0 = vpop.xlane.xlu1 %1606 }
 0x2fa   : > { %v2848_v19 = vpop.eup %2847  ;;  %2049 = vst [vmem:[%s4241_s21 + $0x18] sm:$0xff] %v2017_v3  ;;  %v1928_v6 = vadd.f32 1.0, %v2846_v17  ;;  %2867 = vpow2.f32 %v2307_v28  ;;  %v4257_v44 = vadd.f32 %v4143_v21, %v1764_v15  ;;  %v1664_v16 = vadd.f32 1e-05, %v1632_v57  ;;  %v1601_v40 = vpop.xlane.xlu0 %1600 }
 0x2fb   : > { %v2850_v60 = vpop.eup %2849  ;;  %2046 = vst [vmem:[%s4241_s21] sm:$0xff] %v2014_v23  ;;  %v1929_v30 = vadd.f32 1.0, %v2848_v19  ;;  %2869 = vpow2.f32 %v2304_v14  ;;  %v1665_v53 = vadd.f32 1e-05, %v1633_v8  ;;  %v1639_v36 = vmul.f32 0.03125, %v1599_v39 }
 0x2fc   : > { %v2852_v13 = vpop.eup %2851  ;;  %v2015_v58 = vmul.f32 %v2850_v60, %v4167_v62  ;;  %2871 = vrcp.f32 %v1928_v6  ;;  %v2305_v32 = vmul.f32 -1.442695, %v4257_v44  ;;  %v1636_v17 = vmul.f32 0.03125, %v4236_v46 }
 0x2fd   : > { %v2854_v41 = vpop.eup %2853  ;;  %v2020_v42 = vmul.f32 %v2852_v13, %v4171_v37  ;;  %2873 = vrcp.f32 %v1929_v30  ;;  %v1670_v37 = vadd.f32 1e-05, %v1638_v24  ;;  %v1637_v8 = vmul.f32 0.03125, %v1595_v54  ;;  %v1603_v46 = vpop.xlane.xlu1 %1602 }
 0x2fe   : > { %v2856_v38 = vpop.eup %2855  ;;  %2047 = vst [vmem:[%s4241_s21 + $0x8] sm:$0xff] %v2015_v58  ;;  %v1926_v25 = vadd.f32 1.0, %v2854_v41  ;;  %2875 = vpow2.f32 %v2305_v32  ;;  %v1668_v32 = vadd.f32 1e-05, %v1636_v17  ;;  %v1643_v24 = vmul.f32 0.03125, %v1607_v0  ;;  %v1609_v41 = vpop.xlane.xlu0 %1608 }
 0x2ff   : > { %v2858_v18 = vpop.eup %2857  ;;  %2052 = vst [vmem:[%s4241_s21 + $0x30] sm:$0xff] %v2020_v42  ;;  %v1730_v62 = vmul.f32 %v2856_v38, %v4036_v52  ;;  %2877 = vrsqrt.f32 %v1667_v29  ;;  %v1671_v52 = vadd.f32 1e-05, %v1639_v36  ;;  %v1642_v29 = vmul.f32 0.03125, %v1605_v35 }
 0x300   : > { %v2860_v28 = vpop.eup %2859  ;;  %v2021_v4 = vmul.f32 %v2858_v18, %v4179_v43  ;;  %2879 = vrcp.f32 %v1926_v25  ;;  %v1640_v54 = vmul.f32 0.03125, %v1601_v40  ;;  %v1669_v35 = vadd.f32 1e-05, %v1637_v8 }
 0x301   : > { %v2862_v22 = vpop.eup %2861  ;;  %v1927_v3 = vadd.f32 1.0, %v2860_v28  ;;  %v1769_v14 = vmul.f32 %v4137_v1, %v1730_v62  ;;  %2881 = vrsqrt.f32 %v1664_v16  ;;  %v1641_v25 = vmul.f32 0.03125, %v1603_v46  ;;  %v1611_v40 = vpop.xlane.xlu1 %1610 }
 0x302   : > { %v2864_v39 = vpop.eup %2863  ;;  %2053 = vst [vmem:[%s4241_s21 + $0x38] sm:$0xff] %v2021_v4  ;;  %v2018_v15 = vmul.f32 %v2862_v22, %v4183_v10  ;;  %2883 = vrsqrt.f32 %v1665_v53  ;;  %v1674_v18 = vadd.f32 1e-05, %v1642_v29  ;;  %v1644_v62 = vmul.f32 0.03125, %v1609_v41 }
 0x303   : > { %v2866_v23 = vpop.eup %2865  ;;  %2885 = vrcp.f32 %v1927_v3  ;;  %v1932_v43 = vadd.f32 1.0, %v2864_v39  ;;  %v4274_v57 = vadd.f32 %v4143_v21, %v1769_v14  ;;  %v1673_v39 = vadd.f32 1e-05, %v1641_v25 }
 0x304   : > { %v2868_v19 = vpop.eup %2867  ;;  %2050 = vst [vmem:[%s4241_s21 + $0x20] sm:$0xff] %v2018_v15  ;;  %v2019_v6 = vmul.f32 %v2866_v23, %v4191_v51  ;;  %2887 = vrsqrt.f32 %v1670_v37  ;;  %v1645_v8 = vmul.f32 0.03125, %v1611_v40 }
 0x305   : > { %v2870_v60 = vpop.eup %2869  ;;  %2889 = vrcp.f32 %v1932_v43  ;;  %v1933_v10 = vadd.f32 1.0, %v2868_v19  ;;  %v2310_v30 = vmul.f32 -1.442695, %v4274_v57 }
 0x306   : > { %v2872_v13 = vpop.eup %2871  ;;  %2051 = vst [vmem:[%s4241_s21 + $0x28] sm:$0xff] %v2019_v6  ;;  %v1930_v58 = vadd.f32 1.0, %v2870_v60  ;;  %2891 = vrsqrt.f32 %v1671_v52  ;;  %v1676_v52 = vadd.f32 1e-05, %v1644_v62 }
 0x307   : > { %v2874_v42 = vpop.eup %2873  ;;  %v2024_v51 = vmul.f32 %v2872_v13, %v4197_v33  ;;  %2893 = vrcp.f32 %v1933_v10  ;;  %v1675_v33 = vadd.f32 1e-05, %v1643_v24 }
 0x308   : > { %v2876_v16 = vpop.eup %2875  ;;  %v2025_v38 = vmul.f32 %v2874_v42, %v4207_v61  ;;  %2895 = vrcp.f32 %v1930_v58  ;;  %v1672_v61 = vadd.f32 1e-05, %v1640_v54  ;;  %v1615_v58 = vpop.xlane.xlu1 %1614 }
 0x309   : > { %v2878_v53 = vpop.eup %2877  ;;  %2056 = vst [vmem:[%s4241_s21 + $0x50] sm:$0xff] %v2024_v51  ;;  %v1931_v36 = vadd.f32 1.0, %v2876_v16  ;;  %2897 = vpow2.f32 %v2310_v30  ;;  %v1647_v25 = vmul.f32 0.03125, %v1615_v58 }
 0x30a   : > { %v2880_v0 = vpop.eup %2879  ;;  %2057 = vst [vmem:[%s4241_s21 + $0x58] sm:$0xff] %v2025_v38  ;;  %v1731_v28 = vmul.f32 %v2878_v53, %v4042_v55  ;;  %2899 = vrsqrt.f32 %v1668_v32 }
 0x30b   : > { %v2882_v4 = vpop.eup %2881  ;;  %v2022_v37 = vmul.f32 %v2880_v0, %v4210_v50  ;;  %2901 = vrcp.f32 %v1931_v36 }
 0x30c   : > { %v2884_v22 = vpop.eup %2883  ;;  %v1770_v3 = vmul.f32 %v4137_v1, %v1731_v28  ;;  %v1728_v14 = vmul.f32 %v2882_v4, %v4048_v49  ;;  %2903 = vrsqrt.f32 %v1669_v35 }
 0x30d   : > { %v2886_v15 = vpop.eup %2885  ;;  %2054 = vst [vmem:[%s4241_s21 + $0x40] sm:$0xff] %v2022_v37  ;;  %v1729_v55 = vmul.f32 %v2884_v22, %v4054_v26  ;;  %2905 = vrsqrt.f32 %v1674_v18  ;;  %v1613_v26 = vpop.xlane.xlu0 %1612 }
 0x30e   : > { %v2888_v17 = vpop.eup %2887  ;;  %v2023_v50 = vmul.f32 %v2886_v15, %v4224_v48  ;;  %v4292_v23 = vadd.f32 %v4143_v21, %v1770_v3  ;;  %v1767_v43 = vmul.f32 %v4137_v1, %v1728_v14  ;;  %2907 = vrsqrt.f32 %v1675_v33 }
 0x30f   : > { %v2890_v19 = vpop.eup %2889  ;;  %v1768_v49 = vmul.f32 %v4137_v1, %v1729_v55  ;;  %v1734_v6 = vmul.f32 %v2888_v17, %v4060_v31  ;;  %2909 = vrsqrt.f32 %v1672_v61  ;;  %v1646_v41 = vmul.f32 0.03125, %v1613_v26 }
 0x310   : > { %v2892_v60 = vpop.eup %2891  ;;  %2055 = vst [vmem:[%s4241_s21 + $0x48] sm:$0xff] %v2023_v50  ;;  %v2028_v10 = vmul.f32 %v2890_v19, %v4228_v12  ;;  %v2311_v48 = vmul.f32 -1.442695, %v4292_v23  ;;  %v4301_v30 = vadd.f32 %v4143_v21, %v1767_v43  ;;  %2911 = vrsqrt.f32 %v1673_v39 }
 0x311   : > { %v2894_v29 = vpop.eup %2893  ;;  %v4304_v46 = vadd.f32 %v4143_v21, %v1768_v49  ;;  %v1773_v31 = vmul.f32 %v4137_v1, %v1734_v6  ;;  %v1735_v13 = vmul.f32 %v2892_v60, %v4066_v9  ;;  %2913 = vrsqrt.f32 %v1676_v52 }
 0x312   : > { %v2896_v32 = vpop.eup %2895  ;;  %2060 = vst [vmem:[%s4241_s21 + $0x70] sm:$0xff] %v2028_v10  ;;  %v2029_v12 = vmul.f32 %v2894_v29, %v4239_v5  ;;  %2915 = vpow2.f32 %v2311_v48  ;;  %v2308_v24 = vmul.f32 -1.442695, %v4301_v30  ;;  %v1677_v5 = vadd.f32 1e-05, %v1645_v8 }
 0x313   : > { %v2898_v42 = vpop.eup %2897  ;;  %v2026_v51 = vmul.f32 %v2896_v32, %v4245_v47  ;;  %v2309_v54 = vmul.f32 -1.442695, %v4304_v46  ;;  %v4314_v16 = vadd.f32 %v4143_v21, %v1773_v31  ;;  %v1774_v9 = vmul.f32 %v4137_v1, %v1735_v13 }
 0x314   : > { %v2900_v38 = vpop.eup %2899  ;;  %2061 = vst [vmem:[%s4241_s21 + $0x78] sm:$0xff] %v2029_v12  ;;  %v1936_v35 = vadd.f32 1.0, %v2898_v42  ;;  %2917 = vpow2.f32 %v2308_v24  ;;  %v1678_v28 = vadd.f32 1e-05, %v1646_v41  ;;  %v1679_v3 = vadd.f32 1e-05, %v1647_v25 }
 0x315   : > { %v2902_v53 = vpop.eup %2901  ;;  %2058 = vst [vmem:[%s4241_s21 + $0x60] sm:$0xff] %v2026_v51  ;;  %2919 = vpow2.f32 %v2309_v54  ;;  %v2314_v36 = vmul.f32 -1.442695, %v4314_v16  ;;  %v4321_v47 = vadd.f32 %v4143_v21, %v1774_v9  ;;  %v1732_v18 = vmul.f32 %v2900_v38, %v4072_v2 }
 0x316   : > { %v2904_v62 = vpop.eup %2903  ;;  %v2027_v0 = vmul.f32 %v2902_v53, %v4257_v44  ;;  %2921 = vrcp.f32 %v1936_v35 }
 0x317   : > { %v2906_v33 = vpop.eup %2905  ;;  %2923 = vpow2.f32 %v2314_v36  ;;  %v2315_v4 = vmul.f32 -1.442695, %v4321_v47  ;;  %v1771_v37 = vmul.f32 %v4137_v1, %v1732_v18  ;;  %v1733_v61 = vmul.f32 %v2904_v62, %v4078_v7 }
 0x318   : > { %v2908_v40 = vpop.eup %2907  ;;  %2059 = vst [vmem:[%s4241_s21 + $0x68] sm:$0xff] %v2027_v0  ;;  %v1738_v22 = vmul.f32 %v2906_v33, %v4087_v11  ;;  %2925 = vrsqrt.f32 %v1677_v5 }
 0x319   : > { %v2910_v2 = vpop.eup %2909  ;;  %2927 = vpow2.f32 %v2315_v4  ;;  %v4331_v44 = vadd.f32 %v4143_v21, %v1771_v37  ;;  %v1772_v14 = vmul.f32 %v4137_v1, %v1733_v61  ;;  %v1739_v39 = vmul.f32 %v2908_v40, %v4090_v27 }
 0x31a   : > { %v2912_v15 = vpop.eup %2911  ;;  %v1777_v55 = vmul.f32 %v4137_v1, %v1738_v22  ;;  %v1736_v7 = vmul.f32 %v2910_v2, %v4096_v56  ;;  %2929 = vrsqrt.f32 %v1678_v28 }
 0x31b   : > { %v2914_v52 = vpop.eup %2913  ;;  %v2312_v11 = vmul.f32 -1.442695, %v4331_v44  ;;  %v4339_v17 = vadd.f32 %v4143_v21, %v1772_v14  ;;  %v1778_v50 = vmul.f32 %v4137_v1, %v1739_v39  ;;  %v1737_v43 = vmul.f32 %v2912_v15, %v4102_v20 }
 0x31c   : > { %v2916_v19 = vpop.eup %2915  ;;  %v4344_v49 = vadd.f32 %v4143_v21, %v1777_v55  ;;  %v1775_v27 = vmul.f32 %v4137_v1, %v1736_v7  ;;  %v1740_v6 = vmul.f32 %v2914_v52, %v4111_v34  ;;  %2931 = vrsqrt.f32 %v1679_v3 }
 0x31d   : > { %v1937_v56 = vadd.f32 1.0, %v2916_v19  ;;  %2933 = vpow2.f32 %v2312_v11  ;;  %v2313_v8 = vmul.f32 -1.442695, %v4339_v17  ;;  %v4350_v26 = vadd.f32 %v4143_v21, %v1778_v50 }
 0x31e   : > { %v2918_v60 = vpop.eup %2917  ;;  %v1776_v10 = vmul.f32 %v4137_v1, %v1737_v43  ;;  %v1779_v20 = vmul.f32 %v4137_v1, %v1740_v6  ;;  %v2318_v31 = vmul.f32 -1.442695, %v4344_v49  ;;  %v4356_v34 = vadd.f32 %v4143_v21, %v1775_v27 }
 0x31f   : > { %v2920_v48 = vpop.eup %2919  ;;  %2935 = vrcp.f32 %v1937_v56  ;;  %v1934_v29 = vadd.f32 1.0, %v2918_v60  ;;  %v2319_v41 = vmul.f32 -1.442695, %v4350_v26 }
 0x320   : > { %v2922_v13 = vpop.eup %2921  ;;  %v1935_v58 = vadd.f32 1.0, %v2920_v48  ;;  %2937 = vpow2.f32 %v2313_v8  ;;  %v4359_v32 = vadd.f32 %v4143_v21, %v1776_v10  ;;  %v4364_v42 = vadd.f32 %v4143_v21, %v1779_v20 }
 0x321   : > { %v2924_v12 = vpop.eup %2923  ;;  %v2032_v24 = vmul.f32 %v2922_v13, %v4274_v57  ;;  %2939 = vrcp.f32 %v1934_v29  ;;  %v2316_v38 = vmul.f32 -1.442695, %v4356_v34 }
 0x322   : > { %v2926_v51 = vpop.eup %2925  ;;  %2941 = vrcp.f32 %v1935_v58  ;;  %v1940_v54 = vadd.f32 1.0, %v2924_v12  ;;  %v2317_v57 = vmul.f32 -1.442695, %v4359_v32  ;;  %v2320_v53 = vmul.f32 -1.442695, %v4364_v42 }
 0x323   : > { %v2928_v9 = vpop.eup %2927  ;;  %2064 = vst [vmem:[%s4241_s21 + $0x90] sm:$0xff] %v2032_v24  ;;  %2943 = vpow2.f32 %v2318_v31  ;;  %v1741_v35 = vmul.f32 %v2926_v51, %v4114_v63 }
 0x324   : > { %v2930_v5 = vpop.eup %2929  ;;  %2945 = vrcp.f32 %v1940_v54  ;;  %v1941_v25 = vadd.f32 1.0, %v2928_v9 }
 0x325   : > { %2947 = vpow2.f32 %v2319_v41  ;;  %v1780_v36 = vmul.f32 %v4137_v1, %v1741_v35  ;;  %v1742_v18 = vmul.f32 %v2930_v5, %v4120_v59 }
 0x326   : > { %v2932_v62 = vpop.eup %2931  ;;  %2949 = vrcp.f32 %v1941_v25 }
 0x327   : > { %v2934_v0 = vpop.eup %2933  ;;  %2951 = vpow2.f32 %v2316_v38  ;;  %v4374_v28 = vadd.f32 %v4143_v21, %v1780_v36  ;;  %v1781_v63 = vmul.f32 %v4137_v1, %v1742_v18  ;;  %v1743_v33 = vmul.f32 %v2932_v62, %v4126_v45 }
 0x328   : > { %v1938_v4 = vadd.f32 1.0, %v2934_v0  ;;  %2953 = vpow2.f32 %v2317_v57 }
 0x329   : > { %v2936_v37 = vpop.eup %2935  ;;  %2955 = vpow2.f32 %v2320_v53  ;;  %v2321_v61 = vmul.f32 -1.442695, %v4374_v28  ;;  %v4380_v59 = vadd.f32 %v4143_v21, %v1781_v63  ;;  %v1782_v40 = vmul.f32 %v4137_v1, %v1743_v33 }
 0x32a   : > { %v2938_v22 = vpop.eup %2937  ;;  %v2033_v3 = vmul.f32 %v2936_v37, %v4292_v23  ;;  %2957 = vrcp.f32 %v1938_v4 }
 0x32b   : > { %v2940_v2 = vpop.eup %2939  ;;  %v1939_v14 = vadd.f32 1.0, %v2938_v22  ;;  %2959 = vpow2.f32 %v2321_v61  ;;  %v2322_v45 = vmul.f32 -1.442695, %v4380_v59  ;;  %v4386_v39 = vadd.f32 %v4143_v21, %v1782_v40 }
 0x32c   : > { %v2942_v15 = vpop.eup %2941  ;;  %2065 = vst [vmem:[%s4241_s21 + $0x98] sm:$0xff] %v2033_v3  ;;  %v2030_v55 = vmul.f32 %v2940_v2, %v4301_v30 }
 0x32d   : > { %v2944_v7 = vpop.eup %2943  ;;  %v2031_v1 = vmul.f32 %v2942_v15, %v4304_v46  ;;  %2961 = vrcp.f32 %v1939_v14  ;;  %v2323_v23 = vmul.f32 -1.442695, %v4386_v39 }
 0x32e   : > { %v2946_v52 = vpop.eup %2945  ;;  %2062 = vst [vmem:[%s4241_s21 + $0x80] sm:$0xff] %v2030_v55  ;;  %v1944_v11 = vadd.f32 1.0, %v2944_v7  ;;  %2963 = vpow2.f32 %v2322_v45 }
 0x32f   : > { %v2948_v50 = vpop.eup %2947  ;;  %2063 = vst [vmem:[%s4241_s21 + $0x88] sm:$0xff] %v2031_v1  ;;  %v2036_v21 = vmul.f32 %v2946_v52, %v4314_v16  ;;  %2965 = vpow2.f32 %v2323_v23 }
 0x330   : > { %v2950_v43 = vpop.eup %2949  ;;  %2967 = vrcp.f32 %v1944_v11  ;;  %v1945_v30 = vadd.f32 1.0, %v2948_v50 }
 0x331   : > { %v2952_v19 = vpop.eup %2951  ;;  %2068 = vst [vmem:[%s4241_s21 + $0xb0] sm:$0xff] %v2036_v21  ;;  %v2037_v46 = vmul.f32 %v2950_v43, %v4321_v47 }
 0x332   : > { %v2954_v27 = vpop.eup %2953  ;;  %2969 = vrcp.f32 %v1945_v30  ;;  %v1942_v6 = vadd.f32 1.0, %v2952_v19 }
 0x333   : > { %v2956_v56 = vpop.eup %2955  ;;  %2069 = vst [vmem:[%s4241_s21 + $0xb8] sm:$0xff] %v2037_v46  ;;  %v1943_v8 = vadd.f32 1.0, %v2954_v27 }
 0x334   : > { %v2958_v60 = vpop.eup %2957  ;;  %2971 = vrcp.f32 %v1942_v6  ;;  %v1946_v10 = vadd.f32 1.0, %v2956_v56 }
 0x335   : > { %v2960_v16 = vpop.eup %2959  ;;  %v2034_v20 = vmul.f32 %v2958_v60, %v4331_v44  ;;  %2973 = vrcp.f32 %v1943_v8 }
 0x336   : > { %2975 = vrcp.f32 %v1946_v10  ;;  %v1947_v48 = vadd.f32 1.0, %v2960_v16 }
 0x337   : > { %v2962_v29 = vpop.eup %2961  ;;  %2066 = vst [vmem:[%s4241_s21 + $0xa0] sm:$0xff] %v2034_v20 }
 0x338   : > { %v2964_v47 = vpop.eup %2963  ;;  %v2035_v31 = vmul.f32 %v2962_v29, %v4339_v17  ;;  %2977 = vrcp.f32 %v1947_v48 }
 0x339   : > { %v2966_v13 = vpop.eup %2965  ;;  %v1948_v58 = vadd.f32 1.0, %v2964_v47 }
 0x33a   : > { %v2968_v12 = vpop.eup %2967  ;;  %2067 = vst [vmem:[%s4241_s21 + $0xa8] sm:$0xff] %v2035_v31  ;;  %v1949_v24 = vadd.f32 1.0, %v2966_v13 }
 0x33b   : > { %v2040_v44 = vmul.f32 %v2968_v12, %v4344_v49  ;;  %2979 = vrcp.f32 %v1948_v58 }
 0x33c   : > { %v2970_v41 = vpop.eup %2969  ;;  %2981 = vrcp.f32 %v1949_v24 }
 0x33d   : > { %2072 = vst [vmem:[%s4241_s21 + $0xd0] sm:$0xff] %v2040_v44  ;;  %v2041_v51 = vmul.f32 %v2970_v41, %v4350_v26 }
 0x33e   : > { %v2972_v17 = vpop.eup %2971 }
 0x33f   : > { %v2974_v54 = vpop.eup %2973  ;;  %2073 = vst [vmem:[%s4241_s21 + $0xd8] sm:$0xff] %v2041_v51  ;;  %v2038_v9 = vmul.f32 %v2972_v17, %v4356_v34 }
 0x340   : > { %v2976_v38 = vpop.eup %2975  ;;  %v2039_v35 = vmul.f32 %v2974_v54, %v4359_v32 }
 0x341   : > { %2070 = vst [vmem:[%s4241_s21 + $0xc0] sm:$0xff] %v2038_v9  ;;  %v2042_v49 = vmul.f32 %v2976_v38, %v4364_v42 }
 0x342   : > { %v2978_v5 = vpop.eup %2977  ;;  %2071 = vst [vmem:[%s4241_s21 + $0xc8] sm:$0xff] %v2039_v35 }
 0x343   : > { %2074 = vst [vmem:[%s4241_s21 + $0xe0] sm:$0xff] %v2042_v49  ;;  %v2043_v26 = vmul.f32 %v2978_v5, %v4374_v28 }
 0x345   : > { %v2980_v25 = vpop.eup %2979  ;;  %2075 = vst [vmem:[%s4241_s21 + $0xe8] sm:$0xff] %v2043_v26 }
 0x346   : > { %v2982_v34 = vpop.eup %2981  ;;  %v2044_v57 = vmul.f32 %v2980_v25, %v4380_v59 }
 0x347   : > { %v2045_v32 = vmul.f32 %v2982_v34, %v4386_v39 }
 0x348   : > { %2076 = vst [vmem:[%s4241_s21 + $0xf0] sm:$0xff] %v2044_v57 }
 0x349   : > { %2077 = vst [vmem:[%s4241_s21 + $0xf8] sm:$0xff] %v2045_v32 }
 0x34a   : > { %3112 = shalt.err (!%p3109_p7)
}
 0x34b   : > { %s3113_s15 = scalar_lea.hbm %s4420_s2, 4096  ;;  %s3117_s23 = scalar_lea.hbm %s4477_s8, 8192 }
 0x34c   : > { %p3114_p9 = scmp.ne.s32.totalorder %s4420_s2, %s3113_s15  ;;  %p3118_p11 = scmp.lt.u32.totalorder %s4420_s2, %s4477_s8 }
 0x34d   : > { %p3119_p2 = scmp.lt.u32.totalorder %s3117_s23, %s3113_s15  ;;  %p3121_p1 = scmp.lt.u32.totalorder %s3113_s15, %s4420_s2 }
 0x34e   : > { %p3115_p0 = pnand %p3114_p9, %p4508_p13 }
 0x34f   : > { %p3120_p12 = por %p3119_p2, %p3118_p11 }
 0x350   : > { %p3116_p8 = pneg %p3115_p0 }
 0x351   : > { %p3122_p6 = por %p3121_p1, %p3120_p12 }
 0x353   : > { %p3123_p10 = pnand %p3122_p6, %p3116_p8 }
 0x355   : > { %3126 = shalt.err (!%p3123_p10)
}
 0x356   : > { %s3186_s17 = smov 128   ;;  %s3187_s21 = smov 8  }
 0x357   : > { %2567 = dma.vmem_to_hbm [thread:$0]  (%p4508_p13), %s4422_s18, 4096, %s4420_s2, %s2079_s9, %s3186_s17, %s3186_s17, %s3187_s21  }
 0x358 PF: > { %s2107_s0 = sand.u32 1, %s3165_s27   ;;  %p4509_p4 = scmp.ne.s32.totalorder %s4491_s12, 0 }
 0x359   : > { %p4510_p5 = scmp.ge.s32.totalorder %s3177_s30, 2  ;;  %s2108_s24 = scalar_lea.sflag [#allocation4], %s2107_s0 }
 0x35b   : > { %p2584_p3 = pnand %p4510_p5, %p4509_p4 }
 0x35d   : > { %3160 = dma.done.wait (!%p2584_p3), %s2108_s24, 4096  }
 0x35e   : > { %3162 = vsyncadd (!%p2584_p3), %s2108_s24, 4294963200  ;;  %s4511_s29 = sld [smem:[#allocation16_spill]]  ;;  %s4512_s13 = sld [smem:[#allocation17_spill]] }
 0x35f   : > { %p25_p7 = scmp.ge.s32.totalorder %s3349_s16, 4   ;;  %s4513_s27 = smov %s3169_s28 }
 0x360   : > { %s4516_s30 = smov %s3349_s16 }
 0x361   :  { %27 = sbr.rel (!%p25_p7) target bundleno = 12 (0xc), region = 118 }
 0x364   : > { %s4514_s28 = smov %s4511_s29  ;;  %s4515_s29 = smov %s4512_s13 }
 0x368   :  { %2113 = vsyncpa [#allocation3], 1 }
 0x369   :  { %2115 = vsyncpa [#allocation3 + $0x1], 1 }
 0x36a   :  { %2116 = vsyncpa [#allocation6], 1 }
 0x36b   :  { %2118 = vsyncpa [#allocation6 + $0x1], 1 }
 0x36c   :  { %2119 = vsyncpa [#allocation9], 1 }
 0x36d   :  { %2120 = vsyncpa [#allocation4], 1 }
 0x36e   :  { %2122 = vsyncpa [#allocation4 + $0x1], 1 }

</bundles_post_ra>
